<compile_context>
chip_gen: v7x
topology: tpu7x:2x2x1
jax: 0.10.0
libtpu: 0.0.40
codegen_flags: <defaults>
</compile_context>

<pallas_src>
import functools

import jax
import jax.numpy as jnp
from jax.experimental import pallas as pl
from jax.experimental.pallas import tpu as pltpu


def _round_up(x, m):
    return ((x + m - 1) // m) * m


def _pick_vmem_limit():
    """Generation-aware scoped-VMEM limit: ~3/4 of physical capacity.

    128 MiB chips (v5e/v6e) -> ~96 MiB; 64 MiB chips (v7x) -> ~48 MiB.
    """
    cap = 64 * 1024 * 1024
    try:
        info = pltpu.get_tpu_info()
        cap = int(getattr(info, "vmem_capacity_bytes", cap))
    except Exception:
        pass
    return int(max(32 * 1024 * 1024, min((cap * 3) // 4, 112 * 1024 * 1024)))


def _concat_fusion_kernel(*refs, meta, num_seq_blocks, num_backbones, p_pad,
                          pooling):
    """refs = [per-backbone data inputs...], [w_i, b_i] * nb, out, acc.

    mean_pooling data inputs per backbone:
        h (bn, st_i, d_pad_i)            -- streamed per seq step
        m (bn, s_pad_i, 1) f32, scaled   -- whole seq, resident per batch block
    cls_pooling data inputs per backbone:
        h (bn, 1, d_pad_i)               -- only row 0 (pre-sliced wrapper-side)
    meta: per backbone (lane_offset, d_pad, st, kb).
    """
    nb = num_backbones
    acc_ref = refs[-1]                        # (bn, d_total_pad) f32 scratch
    out_ref = refs[-2]                        # (bn, nb * p_pad)
    param_refs = refs[-(2 + 2 * nb):-2]       # w_0, b_0, w_1, b_1, ...
    data_refs = refs[:-(2 + 2 * nb)]

    k = pl.program_id(1)                      # sequence (reduction) step

    @pl.when(k == 0)
    def _init():
        acc_ref[...] = jnp.zeros_like(acc_ref)

    stride = 2 if pooling == "mean_pooling" else 1
    for i, (off, d, st, kb) in enumerate(meta):
        h_ref = data_refs[stride * i]

        if pooling == "mean_pooling":
            m_ref = data_refs[stride * i + 1]

            def accumulate(h_ref=h_ref, m_ref=m_ref, off=off, d=d, st=st):
                h = h_ref[...]                              # (bn, st, d_pad)
                start = pl.multiple_of(k * st, 8)           # sublane-aligned
                m = m_ref[:, pl.ds(start, st), :]           # (bn, st, 1) f32
                acc_ref[:, off:off + d] += jnp.sum(h * m, axis=1,
                                                   dtype=jnp.float32)

            if kb < num_seq_blocks:
                # Shorter backbone: skip extra steps (its h index_map is
                # clamped, so no extra hidden-state DMA happens either).
                pl.when(k < kb)(accumulate)
            else:
                accumulate()
        else:  # cls_pooling: only row 0 was DMA'd; grab it once.
            def take_cls(h_ref=h_ref, off=off, d=d):
                acc_ref[:, off:off + d] = h_ref[...][:, 0, :].astype(jnp.float32)

            pl.when(k == 0)(take_cls)

    @pl.when(k == num_seq_blocks - 1)
    def _finalize():
        for i, (off, d, st, kb) in enumerate(meta):
            w_ref = param_refs[2 * i]
            b_ref = param_refs[2 * i + 1]
            pooled = acc_ref[:, off:off + d]                # stays f32 (review fix)
            proj = jnp.dot(pooled, w_ref[...].astype(jnp.float32),
                           preferred_element_type=jnp.float32)
            out_ref[:, i * p_pad:(i + 1) * p_pad] = (
                proj + b_ref[...].astype(jnp.float32)).astype(out_ref.dtype)


def concat_fusion(backbones, pooling="mean_pooling", out_dtype=None,
                  batch_tile=8, seq_tile=256, vmem_limit_bytes=None):
    """ConcatFusion forward.

    backbones: list of 2 or 3 tuples
        (hidden_states (n, seq_i, d_i), attention_mask (n, seq_i),
         weight (d_i, P)  [transposed nn.Linear weight], bias (P,) or (1, P)).
    Returns the fused embedding of shape (n, P * len(backbones)).
    """
    num_backbones = len(backbones)
    if num_backbones not in (2, 3):
        raise ValueError("ConcatFusion supports 2 or 3 backbones")
    if pooling not in ("mean_pooling", "cls_pooling"):
        raise NotImplementedError(pooling)

    n = backbones[0][0].shape[0]
    project_size = backbones[0][2].shape[1]
    d_sizes = [hb[0].shape[-1] for hb in backbones]
    d_pads = [_round_up(d, 128) for d in d_sizes]          # lane-align hidden
    d_total_pad = sum(d_pads)
    p_pad = _round_up(project_size, 128)                    # lane-align project
    p_out_pad = p_pad * num_backbones

    if out_dtype is None:
        out_dtype = backbones[0][0].dtype
    if vmem_limit_bytes is None:
        vmem_limit_bytes = _pick_vmem_limit()

    h_itemsizes = [jnp.dtype(hb[0].dtype).itemsize for hb in backbones]
    w_itemsizes = [jnp.dtype(hb[2].dtype).itemsize for hb in backbones]
    out_itemsize = jnp.dtype(out_dtype).itemsize

    # ---- batch tiling: pad n to a multiple of bn; prefer >= 2 batch blocks
    # so the "parallel" axis can be megacore-sharded on v7x.
    n_pad = _round_up(max(n, 1), 8)
    bn = max(8, min(_round_up(batch_tile, 8), n_pad))
    if n_pad // bn < 2 and n_pad >= 16:
        bn = max(8, ((n_pad // 2) // 8) * 8)
    n_pad = _round_up(n_pad, bn)
    num_batch_blocks = n_pad // bn

    # ---- per-backbone seq tiling with a VMEM-budget auto-shrink.
    fixed_bytes = bn * d_total_pad * 4                       # f32 accumulator
    fixed_bytes += 2 * bn * p_out_pad * out_itemsize         # output block
    for i in range(num_backbones):
        fixed_bytes += d_pads[i] * p_pad * w_itemsizes[i]    # weight (resident)
        fixed_bytes += 8 * p_pad * 4                         # bias (padded rows)

    seq_tile_eff = max(8, (int(seq_tile) // 8) * 8)
    while True:
        tiles = []
        stream_bytes = 0
        for i, (h, _, _, _) in enumerate(backbones):
            seq_i = h.shape[1]
            if pooling == "mean_pooling":
                st = min(seq_tile_eff, _round_up(seq_i, 8))
                s_pad = _round_up(seq_i, st)
                kb = s_pad // st
                stream_bytes += 2 * bn * st * d_pads[i] * h_itemsizes[i]  # h x2 bufs
                stream_bytes += bn * s_pad * 128 * 4                      # mask (lane-padded)
            else:
                st, s_pad, kb = 1, seq_i, 1
                stream_bytes += 2 * bn * 8 * d_pads[i] * h_itemsizes[i]
            tiles.append((st, s_pad, kb))
        if (pooling != "mean_pooling"
                or stream_bytes + fixed_bytes <= (vmem_limit_bytes * 7) // 10
                or seq_tile_eff <= 64):
            break
        seq_tile_eff = max(64, ((seq_tile_eff // 2) // 8) * 8)

    # ---- build padded inputs + spec recipes (shape, index_map, resident).
    flat_inputs = []
    spec_recipes = []
    meta = []
    lane_off = 0
    num_seq_blocks = 1
    for i, (h, m, _, _) in enumerate(backbones):
        d_i, d_pad = d_sizes[i], d_pads[i]
        st, s_pad, kb = tiles[i]
        seq_i = h.shape[1]
        num_seq_blocks = max(num_seq_blocks, kb)

        if pooling == "mean_pooling":
            # Fold 1/clamp(sum(mask), 1e-9) into the mask (denominator from
            # the *unpadded* mask) and shape to (n, seq, 1); kernel is then a
            # pure multiply-accumulate.
            m32 = m.astype(jnp.float32)
            inv_den = 1.0 / jnp.maximum(jnp.sum(m32, axis=1, keepdims=True), 1e-9)
            m_scaled = (m32 * inv_den)[:, :, None]
            if (n_pad != n) or (s_pad != seq_i) or (d_pad != d_i):
                h = jnp.pad(h, ((0, n_pad - n), (0, s_pad - seq_i), (0, d_pad - d_i)))
            if (n_pad != n) or (s_pad != seq_i):
                m_scaled = jnp.pad(m_scaled,
                                   ((0, n_pad - n), (0, s_pad - seq_i), (0, 0)))
            flat_inputs.append(h)
            spec_recipes.append((
                (bn, st, d_pad),
                (lambda bb, kk, kb=kb: (bb, jnp.minimum(kk, kb - 1), 0)),
                False))
            flat_inputs.append(m_scaled)
            # Whole per-batch-block mask, fetched once per batch block (index
            # constant along the seq axis), single-buffered when supported.
            spec_recipes.append(((bn, s_pad, 1), (lambda bb, kk: (bb, 0, 0)), True))
        else:  # cls_pooling: only the first sequence row ever reaches the kernel.
            h0 = h[:, :1, :]
            if (n_pad != n) or (d_pad != d_i):
                h0 = jnp.pad(h0, ((0, n_pad - n), (0, 0), (0, d_pad - d_i)))
            flat_inputs.append(h0)
            spec_recipes.append(((bn, 1, d_pad), (lambda bb, kk: (bb, 0, 0)), False))

        meta.append((lane_off, d_pad, st, kb))
        lane_off += d_pad

    # Per-backbone weights/biases (no block-diagonal zero blocks), VMEM-resident.
    for i, (_, _, w, b) in enumerate(backbones):
        d_i, d_pad = d_sizes[i], d_pads[i]
        w_p = w
        if (d_pad != d_i) or (p_pad != project_size):
            w_p = jnp.pad(w, ((0, d_pad - d_i), (0, p_pad - project_size)))
        b_p = jnp.reshape(b, (1, project_size))
        if p_pad != project_size:
            b_p = jnp.pad(b_p, ((0, 0), (0, p_pad - project_size)))
        flat_inputs.append(w_p)
        spec_recipes.append(((d_pad, p_pad), (lambda bb, kk: (0, 0)), True))
        flat_inputs.append(b_p)
        spec_recipes.append(((1, p_pad), (lambda bb, kk: (0, 0)), True))

    # ---- cost estimate (advisory; kernel is HBM-bandwidth bound).
    flops = 0
    bytes_accessed = 0
    for i, (h, _, _, _) in enumerate(backbones):
        seq_i = h.shape[1]
        if pooling == "mean_pooling":
            flops += 2 * n * seq_i * d_sizes[i]
            bytes_accessed += n * seq_i * d_sizes[i] * h_itemsizes[i]
            bytes_accessed += n * seq_i * 4
        else:
            bytes_accessed += n * d_sizes[i] * h_itemsizes[i]
        flops += 2 * n * d_sizes[i] * project_size
        bytes_accessed += d_sizes[i] * project_size * w_itemsizes[i]
    bytes_accessed += n * num_backbones * project_size * out_itemsize
    cost = pl.CostEstimate(flops=int(flops), transcendentals=0,
                           bytes_accessed=int(bytes_accessed))

    out_shape = jax.ShapeDtypeStruct((n_pad, p_out_pad), out_dtype)
    kernel = functools.partial(
        _concat_fusion_kernel, meta=tuple(meta), num_seq_blocks=num_seq_blocks,
        num_backbones=num_backbones, p_pad=p_pad, pooling=pooling)
    out_spec = pl.BlockSpec((bn, p_out_pad), lambda bb, kk: (bb, 0))
    cparams = pltpu.CompilerParams(
        dimension_semantics=("parallel", "arbitrary"),
        vmem_limit_bytes=int(vmem_limit_bytes))

    def _run(single_buffer_resident):
        in_specs = []
        for shape, idx_map, resident in spec_recipes:
            kw = {}
            if resident and single_buffer_resident:
                kw["pipeline_mode"] = pl.Buffered(1)
            in_specs.append(pl.BlockSpec(shape, idx_map, **kw))
        return pl.pallas_call(
            kernel,
            out_shape=out_shape,
            grid=(num_batch_blocks, num_seq_blocks),
            in_specs=in_specs,
            out_specs=out_spec,
            scratch_shapes=[pltpu.VMEM((bn, d_total_pad), jnp.float32)],
            compiler_params=cparams,
            cost_estimate=cost,
        )(*flat_inputs)

    try:
        out = _run(True)      # single-buffer the resident params / masks
    except Exception:
        out = _run(False)     # fall back if pl.Buffered(1) is unsupported here

    # ---- strip wrapper-side padding.
    out = out[:n]
    if p_pad != project_size:
        out = jnp.concatenate(
            [out[:, i * p_pad:i * p_pad + project_size]
             for i in range(num_backbones)], axis=1)
    return out


# ----------------------------------------------------------------------------
# Demo / correctness checks
# ----------------------------------------------------------------------------
def _ref_pool_mean(h, m):
    me = m.astype(jnp.float32)[:, :, None]
    return (h * me).sum(1) / jnp.maximum(me.sum(1), 1e-9)


def _init_linear(key, din, dout):
    # Mimic nn.Linear uniform(-1/sqrt(din), 1/sqrt(din)); weight stored (din, dout).
    kw, kb = jax.random.split(key)
    bound = 1.0 / (din ** 0.5)
    w = jax.random.uniform(kw, (din, dout), jnp.float32, -bound, bound)
    b = jax.random.uniform(kb, (dout,), jnp.float32, -bound, bound)
    return w, b


if __name__ == "__main__":
    key = jax.random.PRNGKey(0)

    # --- Test 1: small shapes, 3 backbones, mean_pooling ---------------------
    n = 2
    seqs = (8, 12, 10)
    hids = (32, 48, 24)
    P = 64
    keys = jax.random.split(key, 12)
    backbones = []
    for i in range(3):
        h = jax.random.normal(keys[3 * i], (n, seqs[i], hids[i]), jnp.float32)
        m = (jax.random.uniform(keys[3 * i + 1], (n, seqs[i])) > 0.3).astype(jnp.float32)
        w, b = _init_linear(keys[3 * i + 2], hids[i], P)
        backbones.append((h, m, w, b))

    out = jax.block_until_ready(concat_fusion(backbones, pooling="mean_pooling"))
    ref = jnp.concatenate(
        [_ref_pool_mean(h, m) @ w + b[None, :] for (h, m, w, b) in backbones], axis=1)
    assert out.shape == (n, 3 * P), out.shape
    assert jnp.allclose(out, ref, atol=1e-5, rtol=1e-5)

    # --- Test 2: multi-step seq reduction + batch tiling, mean_pooling -------
    n2 = 16
    seqs2 = (160, 96, 200)
    hids2 = (128, 256, 64)
    P2 = 128
    keys2 = jax.random.split(keys[-1], 12)
    backbones2 = []
    for i in range(3):
        h = jax.random.normal(keys2[3 * i], (n2, seqs2[i], hids2[i]), jnp.float32)
        m = (jax.random.uniform(keys2[3 * i + 1], (n2, seqs2[i])) > 0.3).astype(jnp.float32)
        w, b = _init_linear(keys2[3 * i + 2], hids2[i], P2)
        backbones2.append((h, m, w, b))

    out2 = jax.block_until_ready(
        concat_fusion(backbones2, pooling="mean_pooling", batch_tile=8, seq_tile=64))
    ref2 = jnp.concatenate(
        [_ref_pool_mean(h, m) @ w + b[None, :] for (h, m, w, b) in backbones2], axis=1)
    assert out2.shape == (n2, 3 * P2), out2.shape
    assert jnp.allclose(out2, ref2, atol=1e-5, rtol=1e-5)

    # --- Test 3: cls_pooling, 2 backbones ------------------------------------
    n3 = 4
    seqs3 = (16, 24)
    hids3 = (32, 64)
    P3 = 64
    keys3 = jax.random.split(keys2[-1], 8)
    backbones3 = []
    for i in range(2):
        h = jax.random.normal(keys3[3 * i], (n3, seqs3[i], hids3[i]), jnp.float32)
        m = jnp.ones((n3, seqs3[i]), jnp.float32)   # unused by cls_pooling
        w, b = _init_linear(keys3[3 * i + 2], hids3[i], P3)
        backbones3.append((h, m, w, b))

    out3 = jax.block_until_ready(concat_fusion(backbones3, pooling="cls_pooling"))
    ref3 = jnp.concatenate(
        [h[:, 0, :] @ w + b[None, :] for (h, _, w, b) in backbones3], axis=1)
    assert out3.shape == (n3, 2 * P3), out3.shape
    assert jnp.allclose(out3, ref3, atol=1e-5, rtol=1e-5)

    print("KERNEL_OK")
</pallas_src>

<mosaic_0001>
module attributes {stable_mosaic.version = 11 : i64} {
  func.func @_concat_fusion_kernel(%arg0: i32, %arg1: i32, %arg2: memref<8x8x128xf32, #tpu.memory_space<vmem>>, %arg3: memref<8x8x1xf32, #tpu.memory_space<vmem>>, %arg4: memref<8x16x128xf32, #tpu.memory_space<vmem>>, %arg5: memref<8x16x1xf32, #tpu.memory_space<vmem>>, %arg6: memref<8x16x128xf32, #tpu.memory_space<vmem>>, %arg7: memref<8x16x1xf32, #tpu.memory_space<vmem>>, %arg8: memref<128x128xf32, #tpu.memory_space<vmem>>, %arg9: memref<1x128xf32, #tpu.memory_space<vmem>>, %arg10: memref<128x128xf32, #tpu.memory_space<vmem>>, %arg11: memref<1x128xf32, #tpu.memory_space<vmem>>, %arg12: memref<128x128xf32, #tpu.memory_space<vmem>>, %arg13: memref<1x128xf32, #tpu.memory_space<vmem>>, %arg14: memref<8x384xf32, #tpu.memory_space<vmem>>, %arg15: memref<8x384xf32, #tpu.memory_space<vmem>>) attributes {dimension_semantics = [#tpu.dimension_semantics<parallel>, #tpu.dimension_semantics<arbitrary>], iteration_bounds = array<i64: 1, 1>, scalar_prefetch = 0 : i64, scratch_operands = 1 : i64, tpu.core_type = #tpu.core_type<tc>, window_params = [{transform_indices = @transform_0, window_bounds = array<i64: 8, 8, 128>}, {pipeline_mode = #tpu.pipeline_mode<synchronous>, transform_indices = @transform_1, window_bounds = array<i64: 8, 8, 1>}, {transform_indices = @transform_2, window_bounds = array<i64: 8, 16, 128>}, {pipeline_mode = #tpu.pipeline_mode<synchronous>, transform_indices = @transform_3, window_bounds = array<i64: 8, 16, 1>}, {transform_indices = @transform_4, window_bounds = array<i64: 8, 16, 128>}, {pipeline_mode = #tpu.pipeline_mode<synchronous>, transform_indices = @transform_5, window_bounds = array<i64: 8, 16, 1>}, {pipeline_mode = #tpu.pipeline_mode<synchronous>, transform_indices = @transform_6, window_bounds = array<i64: 128, 128>}, {pipeline_mode = #tpu.pipeline_mode<synchronous>, transform_indices = @transform_7, window_bounds = array<i64: 1, 128>}, {pipeline_mode = #tpu.pipeline_mode<synchronous>, transform_indices = @transform_8, window_bounds = array<i64: 128, 128>}, {pipeline_mode = #tpu.pipeline_mode<synchronous>, transform_indices = @transform_9, window_bounds = array<i64: 1, 128>}, {pipeline_mode = #tpu.pipeline_mode<synchronous>, transform_indices = @transform_10, window_bounds = array<i64: 128, 128>}, {pipeline_mode = #tpu.pipeline_mode<synchronous>, transform_indices = @transform_11, window_bounds = array<i64: 1, 128>}, {transform_indices = @transform_12, window_bounds = array<i64: 8, 384>}]} {
    %c0_i32 = arith.constant 0 : i32
    %0 = arith.cmpi eq, %arg1, %c0_i32 : i32
    %1 = arith.extui %0 : i1 to i32
    %c0_i32_0 = arith.constant 0 : i32
    %2 = arith.cmpi ne, %1, %c0_i32_0 : i32
    scf.if %2 {
      %cst_30 = arith.constant 0.000000e+00 : f32
      %39 = vector.broadcast %cst_30 : f32 to vector<8x384xf32>
      %c0_31 = arith.constant 0 : index
      %c0_32 = arith.constant 0 : index
      %40 = vector.load %arg15[%c0_31, %c0_32] : memref<8x384xf32, #tpu.memory_space<vmem>>, vector<8x384xf32>
      tpu.vector_store %arg15[%c0_31, %c0_32], %39 {strides = array<i32>} : memref<8x384xf32, #tpu.memory_space<vmem>>, vector<8x384xf32>,
    } else {
    }
    %c0 = arith.constant 0 : index
    %c0_1 = arith.constant 0 : index
    %c0_2 = arith.constant 0 : index
    %3 = vector.load %arg2[%c0, %c0_1, %c0_2] : memref<8x8x128xf32, #tpu.memory_space<vmem>>, vector<8x8x128xf32>
    %c8_i32 = arith.constant 8 : i32
    %4 = arith.muli %arg1, %c8_i32 : i32
    %5 = tpu.assume_multiple %4, 8 : i32
    %c0_3 = arith.constant 0 : index
    %6 = arith.index_cast %5 : i32 to index
    %c0_4 = arith.constant 0 : index
    %7 = vector.load %arg3[%c0_3, %6, %c0_4] : memref<8x8x1xf32, #tpu.memory_space<vmem>>, vector<8x8x1xf32>
    %c0_5 = arith.constant 0 : index
    %c0_6 = arith.constant 0 : index
    %8 = vector.load %arg15[%c0_5, %c0_6] : memref<8x384xf32, #tpu.memory_space<vmem>>, vector<8x128xf32>
    %9 = vector.broadcast %7 : vector<8x8x1xf32> to vector<8x8x128xf32>
    %10 = arith.mulf %3, %9 : vector<8x8x128xf32>
    %cst = arith.constant dense<0.000000e+00> : vector<8x128xf32>
    %11 = vector.multi_reduction <add>, %10, %cst [1] : vector<8x8x128xf32> to vector<8x128xf32>
    %12 = arith.addf %8, %11 : vector<8x128xf32>
    %c0_7 = arith.constant 0 : index
    %c0_8 = arith.constant 0 : index
    %13 = vector.load %arg15[%c0_7, %c0_8] : memref<8x384xf32, #tpu.memory_space<vmem>>, vector<8x128xf32>
    tpu.vector_store %arg15[%c0_7, %c0_8], %12 {strides = array<i32>} : memref<8x384xf32, #tpu.memory_space<vmem>>, vector<8x128xf32>,
    %c0_9 = arith.constant 0 : index
    %c0_10 = arith.constant 0 : index
    %c0_11 = arith.constant 0 : index
    %14 = vector.load %arg4[%c0_9, %c0_10, %c0_11] : memref<8x16x128xf32, #tpu.memory_space<vmem>>, vector<8x16x128xf32>
    %c16_i32 = arith.constant 16 : i32
    %15 = arith.muli %arg1, %c16_i32 : i32
    %16 = tpu.assume_multiple %15, 8 : i32
    %c0_12 = arith.constant 0 : index
    %17 = arith.index_cast %16 : i32 to index
    %c0_13 = arith.constant 0 : index
    %18 = vector.load %arg5[%c0_12, %17, %c0_13] : memref<8x16x1xf32, #tpu.memory_space<vmem>>, vector<8x16x1xf32>
    %c0_14 = arith.constant 0 : index
    %c128 = arith.constant 128 : index
    %19 = vector.load %arg15[%c0_14, %c128] : memref<8x384xf32, #tpu.memory_space<vmem>>, vector<8x128xf32>
    %20 = vector.broadcast %18 : vector<8x16x1xf32> to vector<8x16x128xf32>
    %21 = arith.mulf %14, %20 : vector<8x16x128xf32>
    %cst_15 = arith.constant dense<0.000000e+00> : vector<8x128xf32>
    %22 = vector.multi_reduction <add>, %21, %cst_15 [1] : vector<8x16x128xf32> to vector<8x128xf32>
    %23 = arith.addf %19, %22 : vector<8x128xf32>
    %c0_16 = arith.constant 0 : index
    %c128_17 = arith.constant 128 : index
    %24 = vector.load %arg15[%c0_16, %c128_17] : memref<8x384xf32, #tpu.memory_space<vmem>>, vector<8x128xf32>
    tpu.vector_store %arg15[%c0_16, %c128_17], %23 {strides = array<i32>} : memref<8x384xf32, #tpu.memory_space<vmem>>, vector<8x128xf32>,
    %c0_18 = arith.constant 0 : index
    %c0_19 = arith.constant 0 : index
    %c0_20 = arith.constant 0 : index
    %25 = vector.load %arg6[%c0_18, %c0_19, %c0_20] : memref<8x16x128xf32, #tpu.memory_space<vmem>>, vector<8x16x128xf32>
    %c16_i32_21 = arith.constant 16 : i32
    %26 = arith.muli %arg1, %c16_i32_21 : i32
    %27 = tpu.assume_multiple %26, 8 : i32
    %c0_22 = arith.constant 0 : index
    %28 = arith.index_cast %27 : i32 to index
    %c0_23 = arith.constant 0 : index
    %29 = vector.load %arg7[%c0_22, %28, %c0_23] : memref<8x16x1xf32, #tpu.memory_space<vmem>>, vector<8x16x1xf32>
    %c0_24 = arith.constant 0 : index
    %c256 = arith.constant 256 : index
    %30 = vector.load %arg15[%c0_24, %c256] : memref<8x384xf32, #tpu.memory_space<vmem>>, vector<8x128xf32>
    %31 = vector.broadcast %29 : vector<8x16x1xf32> to vector<8x16x128xf32>
    %32 = arith.mulf %25, %31 : vector<8x16x128xf32>
    %cst_25 = arith.constant dense<0.000000e+00> : vector<8x128xf32>
    %33 = vector.multi_reduction <add>, %32, %cst_25 [1] : vector<8x16x128xf32> to vector<8x128xf32>
    %34 = arith.addf %30, %33 : vector<8x128xf32>
    %c0_26 = arith.constant 0 : index
    %c256_27 = arith.constant 256 : index
    %35 = vector.load %arg15[%c0_26, %c256_27] : memref<8x384xf32, #tpu.memory_space<vmem>>, vector<8x128xf32>
    tpu.vector_store %arg15[%c0_26, %c256_27], %34 {strides = array<i32>} : memref<8x384xf32, #tpu.memory_space<vmem>>, vector<8x128xf32>,
    %c0_i32_28 = arith.constant 0 : i32
    %36 = arith.cmpi eq, %arg1, %c0_i32_28 : i32
    %37 = arith.extui %36 : i1 to i32
    %c0_i32_29 = arith.constant 0 : i32
    %38 = arith.cmpi ne, %37, %c0_i32_29 : i32
    scf.if %38 {
      %c0_30 = arith.constant 0 : index
      %c0_31 = arith.constant 0 : index
      %39 = vector.load %arg15[%c0_30, %c0_31] : memref<8x384xf32, #tpu.memory_space<vmem>>, vector<8x128xf32>
      %c0_32 = arith.constant 0 : index
      %c0_33 = arith.constant 0 : index
      %40 = vector.load %arg8[%c0_32, %c0_33] : memref<128x128xf32, #tpu.memory_space<vmem>>, vector<128x128xf32>
      %cst_34 = arith.constant dense<0.000000e+00> : vector<8x128xf32>
      %41 = tpu.matmul %39, %40, %cst_34 {dimension_numbers = #tpu.dot_dimension_numbers<[1], [0], [0], [1], [0, 0, 1, 1], [], []>} : vector<8x128xf32>, vector<128x128xf32>, vector<8x128xf32> -> vector<8x128xf32>
      %c0_35 = arith.constant 0 : index
      %c0_36 = arith.constant 0 : index
      %42 = vector.load %arg9[%c0_35, %c0_36] : memref<1x128xf32, #tpu.memory_space<vmem>>, vector<1x128xf32>
      %43 = vector.broadcast %42 : vector<1x128xf32> to vector<8x128xf32>
      %44 = arith.addf %41, %43 : vector<8x128xf32>
      %c0_37 = arith.constant 0 : index
      %c0_38 = arith.constant 0 : index
      %45 = vector.load %arg14[%c0_37, %c0_38] : memref<8x384xf32, #tpu.memory_space<vmem>>, vector<8x128xf32>
      tpu.vector_store %arg14[%c0_37, %c0_38], %44 {strides = array<i32>} : memref<8x384xf32, #tpu.memory_space<vmem>>, vector<8x128xf32>,
      %c0_39 = arith.constant 0 : index
      %c128_40 = arith.constant 128 : index
      %46 = vector.load %arg15[%c0_39, %c128_40] : memref<8x384xf32, #tpu.memory_space<vmem>>, vector<8x128xf32>
      %c0_41 = arith.constant 0 : index
      %c0_42 = arith.constant 0 : index
      %47 = vector.load %arg10[%c0_41, %c0_42] : memref<128x128xf32, #tpu.memory_space<vmem>>, vector<128x128xf32>
      %cst_43 = arith.constant dense<0.000000e+00> : vector<8x128xf32>
      %48 = tpu.matmul %46, %47, %cst_43 {dimension_numbers = #tpu.dot_dimension_numbers<[1], [0], [0], [1], [0, 0, 1, 1], [], []>} : vector<8x128xf32>, vector<128x128xf32>, vector<8x128xf32> -> vector<8x128xf32>
      %c0_44 = arith.constant 0 : index
      %c0_45 = arith.constant 0 : index
      %49 = vector.load %arg11[%c0_44, %c0_45] : memref<1x128xf32, #tpu.memory_space<vmem>>, vector<1x128xf32>
      %50 = vector.broadcast %49 : vector<1x128xf32> to vector<8x128xf32>
      %51 = arith.addf %48, %50 : vector<8x128xf32>
      %c0_46 = arith.constant 0 : index
      %c128_47 = arith.constant 128 : index
      %52 = vector.load %arg14[%c0_46, %c128_47] : memref<8x384xf32, #tpu.memory_space<vmem>>, vector<8x128xf32>
      tpu.vector_store %arg14[%c0_46, %c128_47], %51 {strides = array<i32>} : memref<8x384xf32, #tpu.memory_space<vmem>>, vector<8x128xf32>,
      %c0_48 = arith.constant 0 : index
      %c256_49 = arith.constant 256 : index
      %53 = vector.load %arg15[%c0_48, %c256_49] : memref<8x384xf32, #tpu.memory_space<vmem>>, vector<8x128xf32>
      %c0_50 = arith.constant 0 : index
      %c0_51 = arith.constant 0 : index
      %54 = vector.load %arg12[%c0_50, %c0_51] : memref<128x128xf32, #tpu.memory_space<vmem>>, vector<128x128xf32>
      %cst_52 = arith.constant dense<0.000000e+00> : vector<8x128xf32>
      %55 = tpu.matmul %53, %54, %cst_52 {dimension_numbers = #tpu.dot_dimension_numbers<[1], [0], [0], [1], [0, 0, 1, 1], [], []>} : vector<8x128xf32>, vector<128x128xf32>, vector<8x128xf32> -> vector<8x128xf32>
      %c0_53 = arith.constant 0 : index
      %c0_54 = arith.constant 0 : index
      %56 = vector.load %arg13[%c0_53, %c0_54] : memref<1x128xf32, #tpu.memory_space<vmem>>, vector<1x128xf32>
      %57 = vector.broadcast %56 : vector<1x128xf32> to vector<8x128xf32>
      %58 = arith.addf %55, %57 : vector<8x128xf32>
      %c0_55 = arith.constant 0 : index
      %c256_56 = arith.constant 256 : index
      %59 = vector.load %arg14[%c0_55, %c256_56] : memref<8x384xf32, #tpu.memory_space<vmem>>, vector<8x128xf32>
      tpu.vector_store %arg14[%c0_55, %c256_56], %58 {strides = array<i32>} : memref<8x384xf32, #tpu.memory_space<vmem>>, vector<8x128xf32>,
    } else {
    }
    return
  }
  func.func @transform_0(%arg0: i32, %arg1: i32) -> (i32, i32, i32) {
    %c0_i32 = arith.constant 0 : i32
    %0 = arith.minsi %arg1, %c0_i32 : i32
    %c0_i32_0 = arith.constant 0 : i32
    %c0_i32_1 = arith.constant 0 : i32
    return %arg0, %0, %c0_i32_0 : i32, i32, i32
  }
  func.func @transform_1(%arg0: i32, %arg1: i32) -> (i32, i32, i32) {
    %c0_i32 = arith.constant 0 : i32
    %c0_i32_0 = arith.constant 0 : i32
    %c0_i32_1 = arith.constant 0 : i32
    return %arg0, %c0_i32, %c0_i32_0 : i32, i32, i32
  }
  func.func @transform_2(%arg0: i32, %arg1: i32) -> (i32, i32, i32) {
    %c0_i32 = arith.constant 0 : i32
    %0 = arith.minsi %arg1, %c0_i32 : i32
    %c0_i32_0 = arith.constant 0 : i32
    %c0_i32_1 = arith.constant 0 : i32
    return %arg0, %0, %c0_i32_0 : i32, i32, i32
  }
  func.func @transform_3(%arg0: i32, %arg1: i32) -> (i32, i32, i32) {
    %c0_i32 = arith.constant 0 : i32
    %c0_i32_0 = arith.constant 0 : i32
    %c0_i32_1 = arith.constant 0 : i32
    return %arg0, %c0_i32, %c0_i32_0 : i32, i32, i32
  }
  func.func @transform_4(%arg0: i32, %arg1: i32) -> (i32, i32, i32) {
    %c0_i32 = arith.constant 0 : i32
    %0 = arith.minsi %arg1, %c0_i32 : i32
    %c0_i32_0 = arith.constant 0 : i32
    %c0_i32_1 = arith.constant 0 : i32
    return %arg0, %0, %c0_i32_0 : i32, i32, i32
  }
  func.func @transform_5(%arg0: i32, %arg1: i32) -> (i32, i32, i32) {
    %c0_i32 = arith.constant 0 : i32
    %c0_i32_0 = arith.constant 0 : i32
    %c0_i32_1 = arith.constant 0 : i32
    return %arg0, %c0_i32, %c0_i32_0 : i32, i32, i32
  }
  func.func @transform_6(%arg0: i32, %arg1: i32) -> (i32, i32) {
    %c0_i32 = arith.constant 0 : i32
    %c0_i32_0 = arith.constant 0 : i32
    %c0_i32_1 = arith.constant 0 : i32
    return %c0_i32, %c0_i32_0 : i32, i32
  }
  func.func @transform_7(%arg0: i32, %arg1: i32) -> (i32, i32) {
    %c0_i32 = arith.constant 0 : i32
    %c0_i32_0 = arith.constant 0 : i32
    %c0_i32_1 = arith.constant 0 : i32
    return %c0_i32, %c0_i32_0 : i32, i32
  }
  func.func @transform_8(%arg0: i32, %arg1: i32) -> (i32, i32) {
    %c0_i32 = arith.constant 0 : i32
    %c0_i32_0 = arith.constant 0 : i32
    %c0_i32_1 = arith.constant 0 : i32
    return %c0_i32, %c0_i32_0 : i32, i32
  }
  func.func @transform_9(%arg0: i32, %arg1: i32) -> (i32, i32) {
    %c0_i32 = arith.constant 0 : i32
    %c0_i32_0 = arith.constant 0 : i32
    %c0_i32_1 = arith.constant 0 : i32
    return %c0_i32, %c0_i32_0 : i32, i32
  }
  func.func @transform_10(%arg0: i32, %arg1: i32) -> (i32, i32) {
    %c0_i32 = arith.constant 0 : i32
    %c0_i32_0 = arith.constant 0 : i32
    %c0_i32_1 = arith.constant 0 : i32
    return %c0_i32, %c0_i32_0 : i32, i32
  }
  func.func @transform_11(%arg0: i32, %arg1: i32) -> (i32, i32) {
    %c0_i32 = arith.constant 0 : i32
    %c0_i32_0 = arith.constant 0 : i32
    %c0_i32_1 = arith.constant 0 : i32
    return %c0_i32, %c0_i32_0 : i32, i32
  }
  func.func @transform_12(%arg0: i32, %arg1: i32) -> (i32, i32) {
    %c0_i32 = arith.constant 0 : i32
    %c0_i32_0 = arith.constant 0 : i32
    return %arg0, %c0_i32 : i32, i32
  }
}

module attributes {stable_mosaic.version = 11 : i64} {
  func.func @_concat_fusion_kernel(%arg0: i32, %arg1: i32, %arg2: memref<8x8x128xf32, #tpu.memory_space<vmem>>, %arg3: memref<8x8x1xf32, #tpu.memory_space<vmem>>, %arg4: memref<8x16x128xf32, #tpu.memory_space<vmem>>, %arg5: memref<8x16x1xf32, #tpu.memory_space<vmem>>, %arg6: memref<8x16x128xf32, #tpu.memory_space<vmem>>, %arg7: memref<8x16x1xf32, #tpu.memory_space<vmem>>, %arg8: memref<128x128xf32, #tpu.memory_space<vmem>>, %arg9: memref<1x128xf32, #tpu.memory_space<vmem>>, %arg10: memref<128x128xf32, #tpu.memory_space<vmem>>, %arg11: memref<1x128xf32, #tpu.memory_space<vmem>>, %arg12: memref<128x128xf32, #tpu.memory_space<vmem>>, %arg13: memref<1x128xf32, #tpu.memory_space<vmem>>, %arg14: memref<8x384xf32, #tpu.memory_space<vmem>>, %arg15: memref<8x384xf32, #tpu.memory_space<vmem>>) attributes {dimension_semantics = [#tpu.dimension_semantics<parallel>, #tpu.dimension_semantics<arbitrary>], iteration_bounds = array<i64: 1, 1>, scalar_prefetch = 0 : i64, scratch_operands = 1 : i64, tpu.core_type = #tpu.core_type<tc>, window_params = [{transform_indices = @transform_0, window_bounds = array<i64: 8, 8, 128>}, {transform_indices = @transform_1, window_bounds = array<i64: 8, 8, 1>}, {transform_indices = @transform_2, window_bounds = array<i64: 8, 16, 128>}, {transform_indices = @transform_3, window_bounds = array<i64: 8, 16, 1>}, {transform_indices = @transform_4, window_bounds = array<i64: 8, 16, 128>}, {transform_indices = @transform_5, window_bounds = array<i64: 8, 16, 1>}, {pipeline_mode = #tpu.pipeline_mode<synchronous>, transform_indices = @transform_6, window_bounds = array<i64: 128, 128>}, {pipeline_mode = #tpu.pipeline_mode<synchronous>, transform_indices = @transform_7, window_bounds = array<i64: 1, 128>}, {pipeline_mode = #tpu.pipeline_mode<synchronous>, transform_indices = @transform_8, window_bounds = array<i64: 128, 128>}, {pipeline_mode = #tpu.pipeline_mode<synchronous>, transform_indices = @transform_9, window_bounds = array<i64: 1, 128>}, {pipeline_mode = #tpu.pipeline_mode<synchronous>, transform_indices = @transform_10, window_bounds = array<i64: 128, 128>}, {pipeline_mode = #tpu.pipeline_mode<synchronous>, transform_indices = @transform_11, window_bounds = array<i64: 1, 128>}, {transform_indices = @transform_12, window_bounds = array<i64: 8, 384>}]} {
    %c0_i32 = arith.constant 0 : i32
    %0 = arith.cmpi eq, %arg1, %c0_i32 : i32
    %1 = arith.extui %0 : i1 to i32
    %c0_i32_0 = arith.constant 0 : i32
    %2 = arith.cmpi ne, %1, %c0_i32_0 : i32
    scf.if %2 {
      %cst_30 = arith.constant 0.000000e+00 : f32
      %39 = vector.broadcast %cst_30 : f32 to vector<8x384xf32>
      %c0_31 = arith.constant 0 : index
      %c0_32 = arith.constant 0 : index
      %40 = vector.load %arg15[%c0_31, %c0_32] : memref<8x384xf32, #tpu.memory_space<vmem>>, vector<8x384xf32>
      tpu.vector_store %arg15[%c0_31, %c0_32], %39 {strides = array<i32>} : memref<8x384xf32, #tpu.memory_space<vmem>>, vector<8x384xf32>,
    } else {
    }
    %c0 = arith.constant 0 : index
    %c0_1 = arith.constant 0 : index
    %c0_2 = arith.constant 0 : index
    %3 = vector.load %arg2[%c0, %c0_1, %c0_2] : memref<8x8x128xf32, #tpu.memory_space<vmem>>, vector<8x8x128xf32>
    %c8_i32 = arith.constant 8 : i32
    %4 = arith.muli %arg1, %c8_i32 : i32
    %5 = tpu.assume_multiple %4, 8 : i32
    %c0_3 = arith.constant 0 : index
    %6 = arith.index_cast %5 : i32 to index
    %c0_4 = arith.constant 0 : index
    %7 = vector.load %arg3[%c0_3, %6, %c0_4] : memref<8x8x1xf32, #tpu.memory_space<vmem>>, vector<8x8x1xf32>
    %c0_5 = arith.constant 0 : index
    %c0_6 = arith.constant 0 : index
    %8 = vector.load %arg15[%c0_5, %c0_6] : memref<8x384xf32, #tpu.memory_space<vmem>>, vector<8x128xf32>
    %9 = vector.broadcast %7 : vector<8x8x1xf32> to vector<8x8x128xf32>
    %10 = arith.mulf %3, %9 : vector<8x8x128xf32>
    %cst = arith.constant dense<0.000000e+00> : vector<8x128xf32>
    %11 = vector.multi_reduction <add>, %10, %cst [1] : vector<8x8x128xf32> to vector<8x128xf32>
    %12 = arith.addf %8, %11 : vector<8x128xf32>
    %c0_7 = arith.constant 0 : index
    %c0_8 = arith.constant 0 : index
    %13 = vector.load %arg15[%c0_7, %c0_8] : memref<8x384xf32, #tpu.memory_space<vmem>>, vector<8x128xf32>
    tpu.vector_store %arg15[%c0_7, %c0_8], %12 {strides = array<i32>} : memref<8x384xf32, #tpu.memory_space<vmem>>, vector<8x128xf32>,
    %c0_9 = arith.constant 0 : index
    %c0_10 = arith.constant 0 : index
    %c0_11 = arith.constant 0 : index
    %14 = vector.load %arg4[%c0_9, %c0_10, %c0_11] : memref<8x16x128xf32, #tpu.memory_space<vmem>>, vector<8x16x128xf32>
    %c16_i32 = arith.constant 16 : i32
    %15 = arith.muli %arg1, %c16_i32 : i32
    %16 = tpu.assume_multiple %15, 8 : i32
    %c0_12 = arith.constant 0 : index
    %17 = arith.index_cast %16 : i32 to index
    %c0_13 = arith.constant 0 : index
    %18 = vector.load %arg5[%c0_12, %17, %c0_13] : memref<8x16x1xf32, #tpu.memory_space<vmem>>, vector<8x16x1xf32>
    %c0_14 = arith.constant 0 : index
    %c128 = arith.constant 128 : index
    %19 = vector.load %arg15[%c0_14, %c128] : memref<8x384xf32, #tpu.memory_space<vmem>>, vector<8x128xf32>
    %20 = vector.broadcast %18 : vector<8x16x1xf32> to vector<8x16x128xf32>
    %21 = arith.mulf %14, %20 : vector<8x16x128xf32>
    %cst_15 = arith.constant dense<0.000000e+00> : vector<8x128xf32>
    %22 = vector.multi_reduction <add>, %21, %cst_15 [1] : vector<8x16x128xf32> to vector<8x128xf32>
    %23 = arith.addf %19, %22 : vector<8x128xf32>
    %c0_16 = arith.constant 0 : index
    %c128_17 = arith.constant 128 : index
    %24 = vector.load %arg15[%c0_16, %c128_17] : memref<8x384xf32, #tpu.memory_space<vmem>>, vector<8x128xf32>
    tpu.vector_store %arg15[%c0_16, %c128_17], %23 {strides = array<i32>} : memref<8x384xf32, #tpu.memory_space<vmem>>, vector<8x128xf32>,
    %c0_18 = arith.constant 0 : index
    %c0_19 = arith.constant 0 : index
    %c0_20 = arith.constant 0 : index
    %25 = vector.load %arg6[%c0_18, %c0_19, %c0_20] : memref<8x16x128xf32, #tpu.memory_space<vmem>>, vector<8x16x128xf32>
    %c16_i32_21 = arith.constant 16 : i32
    %26 = arith.muli %arg1, %c16_i32_21 : i32
    %27 = tpu.assume_multiple %26, 8 : i32
    %c0_22 = arith.constant 0 : index
    %28 = arith.index_cast %27 : i32 to index
    %c0_23 = arith.constant 0 : index
    %29 = vector.load %arg7[%c0_22, %28, %c0_23] : memref<8x16x1xf32, #tpu.memory_space<vmem>>, vector<8x16x1xf32>
    %c0_24 = arith.constant 0 : index
    %c256 = arith.constant 256 : index
    %30 = vector.load %arg15[%c0_24, %c256] : memref<8x384xf32, #tpu.memory_space<vmem>>, vector<8x128xf32>
    %31 = vector.broadcast %29 : vector<8x16x1xf32> to vector<8x16x128xf32>
    %32 = arith.mulf %25, %31 : vector<8x16x128xf32>
    %cst_25 = arith.constant dense<0.000000e+00> : vector<8x128xf32>
    %33 = vector.multi_reduction <add>, %32, %cst_25 [1] : vector<8x16x128xf32> to vector<8x128xf32>
    %34 = arith.addf %30, %33 : vector<8x128xf32>
    %c0_26 = arith.constant 0 : index
    %c256_27 = arith.constant 256 : index
    %35 = vector.load %arg15[%c0_26, %c256_27] : memref<8x384xf32, #tpu.memory_space<vmem>>, vector<8x128xf32>
    tpu.vector_store %arg15[%c0_26, %c256_27], %34 {strides = array<i32>} : memref<8x384xf32, #tpu.memory_space<vmem>>, vector<8x128xf32>,
    %c0_i32_28 = arith.constant 0 : i32
    %36 = arith.cmpi eq, %arg1, %c0_i32_28 : i32
    %37 = arith.extui %36 : i1 to i32
    %c0_i32_29 = arith.constant 0 : i32
    %38 = arith.cmpi ne, %37, %c0_i32_29 : i32
    scf.if %38 {
      %c0_30 = arith.constant 0 : index
      %c0_31 = arith.constant 0 : index
      %39 = vector.load %arg15[%c0_30, %c0_31] : memref<8x384xf32, #tpu.memory_space<vmem>>, vector<8x128xf32>
      %c0_32 = arith.constant 0 : index
      %c0_33 = arith.constant 0 : index
      %40 = vector.load %arg8[%c0_32, %c0_33] : memref<128x128xf32, #tpu.memory_space<vmem>>, vector<128x128xf32>
      %cst_34 = arith.constant dense<0.000000e+00> : vector<8x128xf32>
      %41 = tpu.matmul %39, %40, %cst_34 {dimension_numbers = #tpu.dot_dimension_numbers<[1], [0], [0], [1], [0, 0, 1, 1], [], []>} : vector<8x128xf32>, vector<128x128xf32>, vector<8x128xf32> -> vector<8x128xf32>
      %c0_35 = arith.constant 0 : index
      %c0_36 = arith.constant 0 : index
      %42 = vector.load %arg9[%c0_35, %c0_36] : memref<1x128xf32, #tpu.memory_space<vmem>>, vector<1x128xf32>
      %43 = vector.broadcast %42 : vector<1x128xf32> to vector<8x128xf32>
      %44 = arith.addf %41, %43 : vector<8x128xf32>
      %c0_37 = arith.constant 0 : index
      %c0_38 = arith.constant 0 : index
      %45 = vector.load %arg14[%c0_37, %c0_38] : memref<8x384xf32, #tpu.memory_space<vmem>>, vector<8x128xf32>
      tpu.vector_store %arg14[%c0_37, %c0_38], %44 {strides = array<i32>} : memref<8x384xf32, #tpu.memory_space<vmem>>, vector<8x128xf32>,
      %c0_39 = arith.constant 0 : index
      %c128_40 = arith.constant 128 : index
      %46 = vector.load %arg15[%c0_39, %c128_40] : memref<8x384xf32, #tpu.memory_space<vmem>>, vector<8x128xf32>
      %c0_41 = arith.constant 0 : index
      %c0_42 = arith.constant 0 : index
      %47 = vector.load %arg10[%c0_41, %c0_42] : memref<128x128xf32, #tpu.memory_space<vmem>>, vector<128x128xf32>
      %cst_43 = arith.constant dense<0.000000e+00> : vector<8x128xf32>
      %48 = tpu.matmul %46, %47, %cst_43 {dimension_numbers = #tpu.dot_dimension_numbers<[1], [0], [0], [1], [0, 0, 1, 1], [], []>} : vector<8x128xf32>, vector<128x128xf32>, vector<8x128xf32> -> vector<8x128xf32>
      %c0_44 = arith.constant 0 : index
      %c0_45 = arith.constant 0 : index
      %49 = vector.load %arg11[%c0_44, %c0_45] : memref<1x128xf32, #tpu.memory_space<vmem>>, vector<1x128xf32>
      %50 = vector.broadcast %49 : vector<1x128xf32> to vector<8x128xf32>
      %51 = arith.addf %48, %50 : vector<8x128xf32>
      %c0_46 = arith.constant 0 : index
      %c128_47 = arith.constant 128 : index
      %52 = vector.load %arg14[%c0_46, %c128_47] : memref<8x384xf32, #tpu.memory_space<vmem>>, vector<8x128xf32>
      tpu.vector_store %arg14[%c0_46, %c128_47], %51 {strides = array<i32>} : memref<8x384xf32, #tpu.memory_space<vmem>>, vector<8x128xf32>,
      %c0_48 = arith.constant 0 : index
      %c256_49 = arith.constant 256 : index
      %53 = vector.load %arg15[%c0_48, %c256_49] : memref<8x384xf32, #tpu.memory_space<vmem>>, vector<8x128xf32>
      %c0_50 = arith.constant 0 : index
      %c0_51 = arith.constant 0 : index
      %54 = vector.load %arg12[%c0_50, %c0_51] : memref<128x128xf32, #tpu.memory_space<vmem>>, vector<128x128xf32>
      %cst_52 = arith.constant dense<0.000000e+00> : vector<8x128xf32>
      %55 = tpu.matmul %53, %54, %cst_52 {dimension_numbers = #tpu.dot_dimension_numbers<[1], [0], [0], [1], [0, 0, 1, 1], [], []>} : vector<8x128xf32>, vector<128x128xf32>, vector<8x128xf32> -> vector<8x128xf32>
      %c0_53 = arith.constant 0 : index
      %c0_54 = arith.constant 0 : index
      %56 = vector.load %arg13[%c0_53, %c0_54] : memref<1x128xf32, #tpu.memory_space<vmem>>, vector<1x128xf32>
      %57 = vector.broadcast %56 : vector<1x128xf32> to vector<8x128xf32>
      %58 = arith.addf %55, %57 : vector<8x128xf32>
      %c0_55 = arith.constant 0 : index
      %c256_56 = arith.constant 256 : index
      %59 = vector.load %arg14[%c0_55, %c256_56] : memref<8x384xf32, #tpu.memory_space<vmem>>, vector<8x128xf32>
      tpu.vector_store %arg14[%c0_55, %c256_56], %58 {strides = array<i32>} : memref<8x384xf32, #tpu.memory_space<vmem>>, vector<8x128xf32>,
    } else {
    }
    return
  }
  func.func @transform_0(%arg0: i32, %arg1: i32) -> (i32, i32, i32) {
    %c0_i32 = arith.constant 0 : i32
    %0 = arith.minsi %arg1, %c0_i32 : i32
    %c0_i32_0 = arith.constant 0 : i32
    %c0_i32_1 = arith.constant 0 : i32
    return %arg0, %0, %c0_i32_0 : i32, i32, i32
  }
  func.func @transform_1(%arg0: i32, %arg1: i32) -> (i32, i32, i32) {
    %c0_i32 = arith.constant 0 : i32
    %c0_i32_0 = arith.constant 0 : i32
    %c0_i32_1 = arith.constant 0 : i32
    return %arg0, %c0_i32, %c0_i32_0 : i32, i32, i32
  }
  func.func @transform_2(%arg0: i32, %arg1: i32) -> (i32, i32, i32) {
    %c0_i32 = arith.constant 0 : i32
    %0 = arith.minsi %arg1, %c0_i32 : i32
    %c0_i32_0 = arith.constant 0 : i32
    %c0_i32_1 = arith.constant 0 : i32
    return %arg0, %0, %c0_i32_0 : i32, i32, i32
  }
  func.func @transform_3(%arg0: i32, %arg1: i32) -> (i32, i32, i32) {
    %c0_i32 = arith.constant 0 : i32
    %c0_i32_0 = arith.constant 0 : i32
    %c0_i32_1 = arith.constant 0 : i32
    return %arg0, %c0_i32, %c0_i32_0 : i32, i32, i32
  }
  func.func @transform_4(%arg0: i32, %arg1: i32) -> (i32, i32, i32) {
    %c0_i32 = arith.constant 0 : i32
    %0 = arith.minsi %arg1, %c0_i32 : i32
    %c0_i32_0 = arith.constant 0 : i32
    %c0_i32_1 = arith.constant 0 : i32
    return %arg0, %0, %c0_i32_0 : i32, i32, i32
  }
  func.func @transform_5(%arg0: i32, %arg1: i32) -> (i32, i32, i32) {
    %c0_i32 = arith.constant 0 : i32
    %c0_i32_0 = arith.constant 0 : i32
    %c0_i32_1 = arith.constant 0 : i32
    return %arg0, %c0_i32, %c0_i32_0 : i32, i32, i32
  }
  func.func @transform_6(%arg0: i32, %arg1: i32) -> (i32, i32) {
    %c0_i32 = arith.constant 0 : i32
    %c0_i32_0 = arith.constant 0 : i32
    %c0_i32_1 = arith.constant 0 : i32
    return %c0_i32, %c0_i32_0 : i32, i32
  }
  func.func @transform_7(%arg0: i32, %arg1: i32) -> (i32, i32) {
    %c0_i32 = arith.constant 0 : i32
    %c0_i32_0 = arith.constant 0 : i32
    %c0_i32_1 = arith.constant 0 : i32
    return %c0_i32, %c0_i32_0 : i32, i32
  }
  func.func @transform_8(%arg0: i32, %arg1: i32) -> (i32, i32) {
    %c0_i32 = arith.constant 0 : i32
    %c0_i32_0 = arith.constant 0 : i32
    %c0_i32_1 = arith.constant 0 : i32
    return %c0_i32, %c0_i32_0 : i32, i32
  }
  func.func @transform_9(%arg0: i32, %arg1: i32) -> (i32, i32) {
    %c0_i32 = arith.constant 0 : i32
    %c0_i32_0 = arith.constant 0 : i32
    %c0_i32_1 = arith.constant 0 : i32
    return %c0_i32, %c0_i32_0 : i32, i32
  }
  func.func @transform_10(%arg0: i32, %arg1: i32) -> (i32, i32) {
    %c0_i32 = arith.constant 0 : i32
    %c0_i32_0 = arith.constant 0 : i32
    %c0_i32_1 = arith.constant 0 : i32
    return %c0_i32, %c0_i32_0 : i32, i32
  }
  func.func @transform_11(%arg0: i32, %arg1: i32) -> (i32, i32) {
    %c0_i32 = arith.constant 0 : i32
    %c0_i32_0 = arith.constant 0 : i32
    %c0_i32_1 = arith.constant 0 : i32
    return %c0_i32, %c0_i32_0 : i32, i32
  }
  func.func @transform_12(%arg0: i32, %arg1: i32) -> (i32, i32) {
    %c0_i32 = arith.constant 0 : i32
    %c0_i32_0 = arith.constant 0 : i32
    return %arg0, %c0_i32 : i32, i32
  }
}

</mosaic_0001>

<bundles_post_ra>
// kernel: tpu_custom_call.1
= control target key start
LH: loop header
LB: loop body
LE: loop exit
PB: predicated region body
PF: predicated region fallthrough
CT: control target
= control target key end

     0   :  { %17 = vsyncpa [#allocation4], 0  ;;  %s1750_s0 = inlined_call_operand.vmem [shape: f32[8,8,128], index: 0, kind: input, shape index: {}]   ;;  %s1751_s1 = inlined_call_operand.vmem [shape: f32[8,8,1], index: 1, kind: input, shape index: {}]   ;;  %s1752_s2 = inlined_call_operand.vmem [shape: f32[8,16,128], index: 2, kind: input, shape index: {}]   ;;  %s1753_s3 = inlined_call_operand.vmem [shape: f32[8,16,1], index: 3, kind: input, shape index: {}]   ;;  %s1754_s4 = inlined_call_operand.vmem [shape: f32[8,16,128], index: 4, kind: input, shape index: {}]   ;;  %s1755_s5 = inlined_call_operand.vmem [shape: f32[8,16,1], index: 5, kind: input, shape index: {}]   ;;  %s1756_s6 = inlined_call_operand.hbm [shape: f32[128,128], index: 6, kind: input, shape index: {}]   ;;  %s1757_s7 = inlined_call_operand.vmem [shape: f32[1,128], index: 7, kind: input, shape index: {}]   ;;  %s1758_s8 = inlined_call_operand.hbm [shape: f32[128,128], index: 8, kind: input, shape index: {}]   ;;  %s1759_s9 = inlined_call_operand.vmem [shape: f32[1,128], index: 9, kind: input, shape index: {}]   ;;  %s1760_s10 = inlined_call_operand.hbm [shape: f32[128,128], index: 10, kind: input, shape index: {}]   ;;  %s1761_s11 = inlined_call_operand.vmem [shape: f32[1,128], index: 11, kind: input, shape index: {}]   ;;  %s1762_s12 = inlined_call_operand.hbm [shape: f32[8,384], index: 12, kind: output, shape index: {}]  }
   0x1   :  { %18 = vsyncpa [#allocation7], 0 }
   0x2   :  { %19 = vsyncpa [#allocation5], 0  ;;  %s1280_s21 = smov [#allocation6]   ;;  %s1281_s23 = smov [#allocation3]  }
   0x3   :  { %s51_s22 = sshll.u32 %s1280_s21, 4  ;;  %s37_s24 = sshll.u32 %s1281_s23, 4  ;;  %s52_s22 = int_to_ptr.vmem [resolvable:$true] %s51_s22  ;;  %s1355_s24 = int_to_ptr.vmem [resolvable:$true] %s37_s24 }
   0x4   :  { %s1186_s27 = scalar_lea.hbm %s1758_s8, 2048 }
   0x5   :  { %p1187_p0 = scmp.ne.s32.totalorder %s1758_s8, %s1186_s27  ;;  %p1190_p1 = scmp.lt.u32.totalorder %s1186_s27, %s1758_s8 }
   0x7   :  { %p1192_p2 = pnand %p1190_p1, %p1187_p0 }
   0x9   :  { %1195 = shalt.err (!%p1192_p2)
}
   0xa   :  { %s1196_s14 = scalar_lea.vmem %s52_s22, 2048  ;;  %p1201_p4 = scmp.lt.s32.totalorder %s52_s22, %s52_s22 }
   0xb   :  { %p1197_p3 = scmp.ne.s32.totalorder %s52_s22, %s1196_s14  ;;  %p1202_p5 = scmp.lt.s32.totalorder %s1196_s14, %s1196_s14 }
   0xd   :  { %p1203_p6 = por %p1202_p5, %p1201_p4 }
   0xf   :  { %p1204_p7 = pnand %p1203_p6, %p1197_p3 }
  0x11   :  { %1207 = shalt.err (!%p1204_p7)
}
  0x12   :  { %s1282_s15 = smov 128   ;;  %s1283_s16 = smov 8  }
  0x13   :  { %57 = dma.hbm_to_vmem [thread:$0]  %s1758_s8, 2048, %s52_s22, [#allocation7], %s1282_s15, %s1282_s15, %s1283_s16  }
  0x14   :  { %s1208_s21 = scalar_lea.hbm %s1756_s6, 2048 }
  0x15   :  { %p1209_p8 = scmp.ne.s32.totalorder %s1756_s6, %s1208_s21  ;;  %p1212_p9 = scmp.lt.u32.totalorder %s1208_s21, %s1756_s6 }
  0x17   :  { %p1214_p10 = pnand %p1212_p9, %p1209_p8 }
  0x19   :  { %1217 = shalt.err (!%p1214_p10)
}
  0x1a   :  { %s1218_s28 = scalar_lea.vmem %s1355_s24, 2048  ;;  %p1223_p12 = scmp.lt.s32.totalorder %s1355_s24, %s1355_s24 }
  0x1b   :  { %p1219_p11 = scmp.ne.s32.totalorder %s1355_s24, %s1218_s28  ;;  %p1224_p13 = scmp.lt.s32.totalorder %s1218_s28, %s1218_s28 }
  0x1d   :  { %p1225_p0 = por %p1224_p13, %p1223_p12 }
  0x1f   :  { %p1226_p1 = pnand %p1225_p0, %p1219_p11 }
  0x21   :  { %1229 = shalt.err (!%p1226_p1)
}
  0x22   :  { %43 = dma.hbm_to_vmem [thread:$0]  %s1756_s6, 2048, %s1355_s24, [#allocation4], %s1282_s15, %s1282_s15, %s1283_s16  }
  0x23   :  { %s1284_s29 = smov [#allocation8]   ;;  %s1230_s17 = scalar_lea.hbm %s1760_s10, 2048 }
  0x24   :  { %s65_s30 = sshll.u32 %s1284_s29, 4  ;;  %p1231_p2 = scmp.ne.s32.totalorder %s1760_s10, %s1230_s17  ;;  %s66_s30 = int_to_ptr.vmem [resolvable:$true] %s65_s30 }
  0x25   :  { %p1234_p3 = scmp.lt.u32.totalorder %s1230_s17, %s1760_s10 }
  0x27   :  { %p1236_p4 = pnand %p1234_p3, %p1231_p2 }
  0x29   :  { %1239 = shalt.err (!%p1236_p4)
}
  0x2a   :  { %s1240_s23 = scalar_lea.vmem %s66_s30, 2048  ;;  %p1245_p6 = scmp.lt.s32.totalorder %s66_s30, %s66_s30 }
  0x2b   :  { %p1241_p5 = scmp.ne.s32.totalorder %s66_s30, %s1240_s23  ;;  %p1246_p7 = scmp.lt.s32.totalorder %s1240_s23, %s1240_s23 }
  0x2d   :  { %p1247_p8 = por %p1246_p7, %p1245_p6 }
  0x2f   :  { %p1248_p9 = pnand %p1247_p8, %p1241_p5 }
  0x31   :  { %1251 = shalt.err (!%p1248_p9)
}
  0x32   :  { %71 = dma.hbm_to_vmem [thread:$0]  %s1760_s10, 2048, %s66_s30, [#allocation7], %s1282_s15, %s1282_s15, %s1283_s16  }
  0x33   :  { %1274 = dma.done.wait [#allocation4], 2048  }
  0x34   :  { %1275 = vsyncadd [#allocation4], 4294965248 }
  0x35   :  { %1276 = dma.done.wait [#allocation7], 4096  }
  0x36   :  { %1277 = vsyncadd [#allocation7], 4294963200  ;;  %v1285_v0 = vmov 0   ;;  %v1286_v1 = vmov 0.0|0.0   ;;  %v102_v2 = vld [vmem:[%s1751_s1 + $0x10] sm:$0xff]  ;;  %v100_v3 = vld [vmem:[%s1751_s1] sm:$0xff] }
  0x37   :  { %1185 = vset.pattern.permute.xlu1 %v1285_v0  ;;  %1184 = vset.pattern.permute.xlu0 %v1285_v0  ;;  %v103_v4 = vld [vmem:[%s1751_s1 + $0x18] sm:$0xff]  ;;  %v101_v5 = vld [vmem:[%s1751_s1 + $0x8] sm:$0xff]  ;;  %v104_v7 = vld [vmem:[%s1751_s1 + $0x20] sm:$0xff]  ;;  %vm1287_vm0 = vmmov 0   ;;  %v1288_v37 = vmov 0.0   ;;  %vm213_vm1 = vcmask 1041409  }
  0x38   :  { %1102 = vmatprep.subr.bf16.mxu0 %v1286_v1  ;;  %1126 = vmatprep.subr.bf16.mxu1 %v1286_v1  ;;  %v105_v6 = vld [vmem:[%s1751_s1 + $0x28] sm:$0xff]  ;;  %v107_v8 = vld [vmem:[%s1751_s1 + $0x38] sm:$0xff]  ;;  %v106_v9 = vld [vmem:[%s1751_s1 + $0x30] sm:$0xff]  ;;  %vm215_vm2 = vcmask 1042434   ;;  %vm217_vm3 = vcmask 1043459   ;;  %vm219_vm4 = vcmask 1044484  }
  0x39   :  { %121 = vperm.xlu1 %1185, %v102_v2   ;;  %111 = vperm.xlu0 %1184, %v100_v3   ;;  %v643_v10 = vld [vmem:[#allocation3] sm:$0xff]  ;;  %v644_v11 = vld [vmem:[#allocation3 + $0x8] sm:$0xff]  ;;  %v645_v15 = vld [vmem:[#allocation3 + $0x10] sm:$0xff]  ;;  %vm221_vm5 = vcmask 1045509   ;;  %vm223_vm6 = vcmask 1046534   ;;  %vm225_vm7 = vcmask 1047559  }
  0x3a   :  { %v249_v12 = vld [vmem:[%s1753_s3 + $0x8] sm:$0xff]  ;;  %v248_v13 = vld [vmem:[%s1753_s3] sm:$0xff]  ;;  %v1103_v14 = vpack.c.bf16 %v644_v11, %v643_v10  ;;  %v646_v16 = vld [vmem:[#allocation3 + $0x18] sm:$0xff]  ;;  %1029 = vmatprep.mubr.msk.f32.mxu0 %vm1287_vm0, %v1288_v37  ;;  %1064 = vmatprep.mubr.msk.f32.mxu1 %vm1287_vm0, %v1288_v37  ;;  %s1289_s24 = smov [#allocation9]  }
  0x3b   :  { %v1106_v17 = vpack.c.bf16 %v646_v16, %v645_v15  ;;  %v647_v18 = vld [vmem:[#allocation3 + $0x20] sm:$0xff]  ;;  %v648_v19 = vld [vmem:[#allocation3 + $0x28] sm:$0xff]  ;;  %v251_v20 = vld [vmem:[%s1753_s3 + $0x18] sm:$0xff]  ;;  %s933_s25 = sshll.u32 %s1289_s24, 4  ;;  %s934_s25 = int_to_ptr.vmem [resolvable:$true] %s933_s25 }
  0x3c   :  { %1104 = vmatpush3.bf16.msra.mxu0 %v1103_v14  ;;  %v250_v21 = vld [vmem:[%s1753_s3 + $0x10] sm:$0xff]  ;;  %v1109_v22 = vpack.c.bf16 %v648_v19, %v647_v18  ;;  %v650_v24 = vld [vmem:[#allocation3 + $0x38] sm:$0xff]  ;;  %v453_v25 = vld [vmem:[%s1755_s5 + $0x8] sm:$0xff]  ;;  %p1257_p11 = scmp.lt.s32.totalorder %s934_s25, %s934_s25 }
  0x3d   :  { %126 = vperm.xlu1 %1185, %v103_v4   ;;  %116 = vperm.xlu0 %1184, %v101_v5   ;;  %v649_v23 = vld [vmem:[#allocation3 + $0x30] sm:$0xff]  ;;  %v452_v26 = vld [vmem:[%s1755_s5] sm:$0xff]  ;;  %v652_v29 = vld [vmem:[#allocation3 + $0x48] sm:$0xff] }
  0x3e   :  { %1105 = vmatprep.subr.bf16.mxu0 %v1286_v1  ;;  %v1112_v27 = vpack.c.bf16 %v650_v24, %v649_v23  ;;  %v651_v28 = vld [vmem:[#allocation3 + $0x40] sm:$0xff]  ;;  %v455_v30 = vld [vmem:[%s1755_s5 + $0x18] sm:$0xff]  ;;  %v454_v31 = vld [vmem:[%s1755_s5 + $0x10] sm:$0xff] }
  0x3f   :  { %v1115_v32 = vpack.c.bf16 %v652_v29, %v651_v28  ;;  %v653_v33 = vld [vmem:[#allocation3 + $0x50] sm:$0xff]  ;;  %v654_v34 = vld [vmem:[#allocation3 + $0x58] sm:$0xff]  ;;  %v253_v35 = vld [vmem:[%s1753_s3 + $0x28] sm:$0xff] }
  0x40   :  { %1107 = vmatpush3.bf16.msra.mxu0 %v1106_v17  ;;  %v252_v36 = vld [vmem:[%s1753_s3 + $0x20] sm:$0xff]  ;;  %v1118_v38 = vpack.c.bf16 %v654_v34, %v653_v33  ;;  %v656_v40 = vld [vmem:[#allocation3 + $0x68] sm:$0xff]  ;;  %v657_v44 = vld [vmem:[#allocation3 + $0x70] sm:$0xff] }
  0x41   :  { %136 = vperm.xlu1 %1185, %v105_v6   ;;  %131 = vperm.xlu0 %1184, %v104_v7   ;;  %v655_v39 = vld [vmem:[#allocation3 + $0x60] sm:$0xff]  ;;  %v457_v41 = vld [vmem:[%s1755_s5 + $0x28] sm:$0xff]  ;;  %v658_v45 = vld [vmem:[#allocation3 + $0x78] sm:$0xff] }
  0x42   :  { %1108 = vmatprep.subr.bf16.mxu0 %v1286_v1  ;;  %v456_v42 = vld [vmem:[%s1755_s5 + $0x20] sm:$0xff]  ;;  %v1121_v43 = vpack.c.bf16 %v656_v40, %v655_v39  ;;  %v255_v46 = vld [vmem:[%s1753_s3 + $0x38] sm:$0xff]  ;;  %v254_v47 = vld [vmem:[%s1753_s3 + $0x30] sm:$0xff]  ;;  %v1124_v48 = vpack.c.bf16 %v658_v45, %v657_v44 }
  0x43   :  { %v459_v49 = vld [vmem:[%s1755_s5 + $0x38] sm:$0xff]  ;;  %v458_v50 = vld [vmem:[%s1755_s5 + $0x30] sm:$0xff]  ;;  %v257_v51 = vld [vmem:[%s1753_s3 + $0x48] sm:$0xff] }
  0x44   :  { %1110 = vmatpush3.bf16.msra.mxu0 %v1109_v22  ;;  %v256_v52 = vld [vmem:[%s1753_s3 + $0x40] sm:$0xff]  ;;  %v461_v53 = vld [vmem:[%s1755_s5 + $0x48] sm:$0xff]  ;;  %v259_v55 = vld [vmem:[%s1753_s3 + $0x58] sm:$0xff] }
  0x45   :  { %146 = vperm.xlu1 %1185, %v107_v8   ;;  %141 = vperm.xlu0 %1184, %v106_v9   ;;  %v460_v54 = vld [vmem:[%s1755_s5 + $0x40] sm:$0xff]  ;;  %v258_v56 = vld [vmem:[%s1753_s3 + $0x50] sm:$0xff]  ;;  %v463_v57 = vld [vmem:[%s1755_s5 + $0x58] sm:$0xff] }
  0x46   :  { %1111 = vmatprep.subr.bf16.mxu0 %v1286_v1  ;;  %v462_v58 = vld [vmem:[%s1755_s5 + $0x50] sm:$0xff]  ;;  %v738_v59 = vld [vmem:[#allocation6] sm:$0xff]  ;;  %v739_v60 = vld [vmem:[#allocation6 + $0x8] sm:$0xff] }
  0x47   :  { %v1127_v61 = vpack.c.bf16 %v739_v60, %v738_v59  ;;  %v261_v62 = vld [vmem:[%s1753_s3 + $0x68] sm:$0xff]  ;;  %v260_v63 = vld [vmem:[%s1753_s3 + $0x60] sm:$0xff]  ;;  %v740_v0 = vld [vmem:[#allocation6 + $0x10] sm:$0xff] }
  0x48   :  { %1113 = vmatpush3.bf16.msra.mxu0 %v1112_v27  ;;  %v741_v2 = vld [vmem:[#allocation6 + $0x18] sm:$0xff]  ;;  %v465_v4 = vld [vmem:[%s1755_s5 + $0x68] sm:$0xff]  ;;  %v464_v5 = vld [vmem:[%s1755_s5 + $0x60] sm:$0xff] }
  0x49   :  { %272 = vperm.xlu1 %1185, %v249_v12   ;;  %267 = vperm.xlu0 %1184, %v248_v13   ;;  %v1130_v3 = vpack.c.bf16 %v741_v2, %v740_v0  ;;  %v742_v6 = vld [vmem:[#allocation6 + $0x20] sm:$0xff]  ;;  %v743_v7 = vld [vmem:[#allocation6 + $0x28] sm:$0xff]  ;;  %v263_v9 = vld [vmem:[%s1753_s3 + $0x78] sm:$0xff] }
  0x4a   :  { %1114 = vmatprep.subr.bf16.mxu0 %v1286_v1  ;;  %1128 = vmatpush3.bf16.msra.mxu1 %v1127_v61  ;;  %v1133_v8 = vpack.c.bf16 %v743_v7, %v742_v6  ;;  %v262_v10 = vld [vmem:[%s1753_s3 + $0x70] sm:$0xff]  ;;  %v745_v12 = vld [vmem:[#allocation6 + $0x38] sm:$0xff]  ;;  %v746_v16 = vld [vmem:[#allocation6 + $0x40] sm:$0xff] }
  0x4b   :  { %1129 = vmatprep.subr.bf16.mxu1 %v1286_v1  ;;  %v744_v11 = vld [vmem:[#allocation6 + $0x30] sm:$0xff]  ;;  %v467_v14 = vld [vmem:[%s1755_s5 + $0x78] sm:$0xff]  ;;  %v747_v17 = vld [vmem:[#allocation6 + $0x48] sm:$0xff] }
  0x4c   :  { %1116 = vmatpush3.bf16.msra.mxu0 %v1115_v32  ;;  %v1136_v13 = vpack.c.bf16 %v745_v12, %v744_v11  ;;  %v466_v15 = vld [vmem:[%s1755_s5 + $0x70] sm:$0xff]  ;;  %v1139_v18 = vpack.c.bf16 %v747_v17, %v746_v16  ;;  %v750_v22 = vld [vmem:[#allocation6 + $0x60] sm:$0xff]  ;;  %v751_v23 = vld [vmem:[#allocation6 + $0x68] sm:$0xff] }
  0x4d   :  { %282 = vperm.xlu1 %1185, %v251_v20   ;;  %277 = vperm.xlu0 %1184, %v250_v21   ;;  %v748_v19 = vld [vmem:[#allocation6 + $0x50] sm:$0xff]  ;;  %v749_v20 = vld [vmem:[#allocation6 + $0x58] sm:$0xff]  ;;  %v1145_v24 = vpack.c.bf16 %v751_v23, %v750_v22  ;;  %v90_v29 = vld [vmem:[%s1750_s0] sm:$0xff] }
  0x4e   :  { %1117 = vmatprep.subr.bf16.mxu0 %v1286_v1  ;;  %1131 = vmatpush3.bf16.msra.mxu1 %v1130_v3  ;;  %v1142_v21 = vpack.c.bf16 %v749_v20, %v748_v19  ;;  %v92_v28 = vld [vmem:[%s1750_s0 + $0x10] sm:$0xff]  ;;  %v93_v34 = vld [vmem:[%s1750_s0 + $0x18] sm:$0xff] }
  0x4f   :  { %1132 = vmatprep.subr.bf16.mxu1 %v1286_v1  ;;  %v97_v61 = vld [vmem:[%s1750_s0 + $0x38] sm:$0xff] }
  0x50   :  { %1119 = vmatpush3.bf16.msra.mxu0 %v1118_v38 }
  0x51   :  { %476 = vperm.xlu1 %1185, %v453_v25   ;;  %471 = vperm.xlu0 %1184, %v452_v26   ;;  %v752_v25 = vld [vmem:[#allocation6 + $0x70] sm:$0xff]  ;;  %v753_v26 = vld [vmem:[#allocation6 + $0x78] sm:$0xff] }
  0x52   :  { %1120 = vmatprep.subr.bf16.mxu0 %v1286_v1  ;;  %1134 = vmatpush3.bf16.msra.mxu1 %v1133_v8  ;;  %v1148_v27 = vpack.c.bf16 %v753_v26, %v752_v25 }
  0x53   :  { %1135 = vmatprep.subr.bf16.mxu1 %v1286_v1 }
  0x54   :  { %1122 = vmatpush3.bf16.msra.mxu0 %v1121_v43 }
  0x55   :  { %486 = vperm.xlu1 %1185, %v455_v30   ;;  %481 = vperm.xlu0 %1184, %v454_v31  }
  0x56   :  { %1123 = vmatprep.subr.bf16.mxu0 %v1286_v1  ;;  %1137 = vmatpush3.bf16.msra.mxu1 %v1136_v13 }
  0x57   :  { %1138 = vmatprep.subr.bf16.mxu1 %v1286_v1 }
  0x58   :  { %1125 = vmatpush3.bf16.msra.mxu0 %v1124_v48 }
  0x59   :  { %292 = vperm.xlu1 %1185, %v253_v35   ;;  %287 = vperm.xlu0 %1184, %v252_v36   ;;  %v91_v35 = vld [vmem:[%s1750_s0 + $0x8] sm:$0xff] }
  0x5a   :  { %1150 = vmatprep.subr.bf16.mxu0 %v1286_v1  ;;  %1140 = vmatpush3.bf16.msra.mxu1 %v1139_v18 }
  0x5b   :  { %1141 = vmatprep.subr.bf16.mxu1 %v1286_v1 }
  0x5d   :  { %496 = vperm.xlu1 %1185, %v457_v41   ;;  %491 = vperm.xlu0 %1184, %v456_v42  }
  0x5e   :  { %1143 = vmatpush3.bf16.msra.mxu1 %v1142_v21 }
  0x5f   :  { %1144 = vmatprep.subr.bf16.mxu1 %v1286_v1 }
  0x61   :  { %302 = vperm.xlu1 %1185, %v255_v46   ;;  %297 = vperm.xlu0 %1184, %v254_v47  }
  0x62   :  { %1146 = vmatpush3.bf16.msra.mxu1 %v1145_v24 }
  0x63   :  { %1147 = vmatprep.subr.bf16.mxu1 %v1286_v1 }
  0x65   :  { %506 = vperm.xlu1 %1185, %v459_v49   ;;  %501 = vperm.xlu0 %1184, %v458_v50   ;;  %v95_v49 = vld [vmem:[%s1750_s0 + $0x28] sm:$0xff]  ;;  %v94_v50 = vld [vmem:[%s1750_s0 + $0x20] sm:$0xff] }
  0x66   :  { %1149 = vmatpush3.bf16.msra.mxu1 %v1148_v27 }
  0x69   :  { %312 = vperm.xlu1 %1185, %v257_v51   ;;  %307 = vperm.xlu0 %1184, %v256_v52  }
  0x6d   :  { %516 = vperm.xlu1 %1185, %v461_v53   ;;  %511 = vperm.xlu0 %1184, %v460_v54  }
  0x71   :  { %322 = vperm.xlu1 %1185, %v259_v55   ;;  %317 = vperm.xlu0 %1184, %v258_v56  }
  0x75   :  { %526 = vperm.xlu1 %1185, %v463_v57   ;;  %521 = vperm.xlu0 %1184, %v462_v58  }
  0x79   :  { %332 = vperm.xlu1 %1185, %v261_v62   ;;  %327 = vperm.xlu0 %1184, %v260_v63   ;;  %v96_v62 = vld [vmem:[%s1750_s0 + $0x30] sm:$0xff] }
  0x7d   :  { %536 = vperm.xlu1 %1185, %v465_v4   ;;  %531 = vperm.xlu0 %1184, %v464_v5  }
  0x81   :  { %342 = vperm.xlu1 %1185, %v263_v9   ;;  %337 = vperm.xlu0 %1184, %v262_v10  }
  0x85   :  { %546 = vperm.xlu1 %1185, %v467_v14   ;;  %541 = vperm.xlu0 %1184, %v466_v15  }
  0xb8   :  { %v122_v30 = vpop.permute.xlu1 %121  ;;  %v112_v31 = vpop.permute.xlu0 %111 }
  0xb9   :  { %v151_v32 = vmul.f32 %v122_v30, %v92_v28  ;;  %v149_v33 = vmul.f32 %v112_v31, %v90_v29 }
  0xbb   :  { %v169_v36 = vrot.slane %v151_v32, 4  ;;  %v157_v38 = vrot.slane %v149_v33, 4 }
  0xbc   :  { %v127_v39 = vpop.permute.xlu1 %126  ;;  %v117_v40 = vpop.permute.xlu0 %116 }
  0xbd   :  { %v170_v41 = vadd.f32 %v169_v36, %v151_v32  ;;  %v158_v42 = vadd.f32 %v157_v38, %v149_v33  ;;  %v152_v43 = vmul.f32 %v127_v39, %v93_v34  ;;  %v150_v44 = vmul.f32 %v117_v40, %v91_v35 }
  0xbf   :  { %v171_v45 = vrot.slane %v170_v41, 2  ;;  %v159_v46 = vrot.slane %v158_v42, 2  ;;  %v175_v47 = vrot.slane %v152_v43, 4  ;;  %v163_v48 = vrot.slane %v150_v44, 4 }
  0xc0   :  { %v137_v51 = vpop.permute.xlu1 %136  ;;  %v132_v52 = vpop.permute.xlu0 %131 }
  0xc1   :  { %v160_v53 = vadd.f32 %v159_v46, %v158_v42  ;;  %v176_v54 = vadd.f32 %v175_v47, %v152_v43  ;;  %v164_v55 = vadd.f32 %v163_v48, %v150_v44  ;;  %v154_v56 = vmul.f32 %v137_v51, %v95_v49  ;;  %v833_v47 = vld [vmem:[#allocation8] sm:$0xff]  ;;  %v834_v48 = vld [vmem:[#allocation8 + $0x8] sm:$0xff] }
  0xc2   :  { %v153_v57 = vmul.f32 %v132_v52, %v94_v50  ;;  %v172_v58 = vadd.f32 %v171_v45, %v170_v41 }
  0xc3   :  { %v177_v59 = vrot.slane %v176_v54, 2  ;;  %v165_v60 = vrot.slane %v164_v55, 2  ;;  %v187_v63 = vrot.slane %v154_v56, 4  ;;  %v161_v4 = vrot.slane %v160_v53, 1 }
  0xc4   :  { %v181_v0 = vrot.slane %v153_v57, 4  ;;  %v147_v2 = vpop.permute.xlu1 %146  ;;  %v142_v3 = vpop.permute.xlu0 %141  ;;  %v173_v11 = vrot.slane %v172_v58, 1 }
  0xc5   :  { %v178_v5 = vadd.f32 %v177_v59, %v176_v54  ;;  %v166_v6 = vadd.f32 %v165_v60, %v164_v55  ;;  %v188_v7 = vadd.f32 %v187_v63, %v154_v56  ;;  %v156_v9 = vmul.f32 %v147_v2, %v97_v61  ;;  %v835_v56 = vld [vmem:[#allocation8 + $0x10] sm:$0xff]  ;;  %v231_v59 = vld [vmem:[%s1752_s2 + $0x8] sm:$0xff]  ;;  %v230_v60 = vld [vmem:[%s1752_s2] sm:$0xff] }
  0xc6   :  { %v182_v8 = vadd.f32 %v181_v0, %v153_v57  ;;  %v155_v10 = vmul.f32 %v142_v3, %v96_v62  ;;  %v162_v19 = vadd.f32 %v161_v4, %v160_v53  ;;  %v174_v26 = vadd.f32 %v173_v11, %v172_v58  ;;  %v836_v57 = vld [vmem:[#allocation8 + $0x18] sm:$0xff]  ;;  %v232_v2 = vld [vmem:[%s1752_s2 + $0x10] sm:$0xff]  ;;  %v837_v3 = vld [vmem:[#allocation8 + $0x20] sm:$0xff] }
  0xc7   :  { %v167_v12 = vrot.slane %v166_v6, 1  ;;  %v189_v13 = vrot.slane %v188_v7, 2  ;;  %v199_v15 = vrot.slane %v156_v9, 4  ;;  %v179_v20 = vrot.slane %v178_v5, 1  ;;  %v233_v61 = vld [vmem:[%s1752_s2 + $0x18] sm:$0xff]  ;;  %v838_v4 = vld [vmem:[#allocation8 + $0x28] sm:$0xff] }
  0xc8   :  { %v183_v14 = vrot.slane %v182_v8, 2  ;;  %v193_v16 = vrot.slane %v155_v10, 4  ;;  %v273_v17 = vpop.permute.xlu1 %272  ;;  %v268_v18 = vpop.permute.xlu0 %267  ;;  %v1151_v55 = vpack.c.bf16 %v834_v48, %v833_v47  ;;  %v1154_v0 = vpack.c.bf16 %v836_v57, %v835_v56 }
  0xc9   :  { %v168_v21 = vadd.f32 %v167_v12, %v166_v6  ;;  %v190_v22 = vadd.f32 %v189_v13, %v188_v7  ;;  %v200_v24 = vadd.f32 %v199_v15, %v156_v9  ;;  %v180_v34 = vadd.f32 %v179_v20, %v178_v5  ;;  %v840_v12 = vld [vmem:[#allocation8 + $0x38] sm:$0xff] }
  0xca   :  { %v184_v23 = vadd.f32 %v183_v14, %v182_v8  ;;  %v194_v25 = vadd.f32 %v193_v16, %v155_v10  ;;  %v346_v5 = vmul.f32 %v273_v17, %v231_v59  ;;  %v345_v6 = vmul.f32 %v268_v18, %v230_v60  ;;  %v841_v17 = vld [vmem:[#allocation8 + $0x40] sm:$0xff]  ;;  %v842_v18 = vld [vmem:[#allocation8 + $0x48] sm:$0xff]  ;;  %v847_v59 = vld [vmem:[#allocation8 + $0x70] sm:$0xff] }
  0xcb   :  { %v214_v27 = vsel %vm213_vm1, %v168_v21, %v162_v19  ;;  %v191_v28 = vrot.slane %v190_v22, 1  ;;  %v201_v30 = vrot.slane %v200_v24, 2  ;;  %v1157_v11 = vpack.c.bf16 %v838_v4, %v837_v3  ;;  %v848_v60 = vld [vmem:[#allocation8 + $0x78] sm:$0xff]  ;;  %v441_v3 = vld [vmem:[%s1754_s4 + $0x30] sm:$0xff] }
  0xcc   :  { %v185_v29 = vrot.slane %v184_v23, 1  ;;  %v195_v31 = vrot.slane %v194_v25, 2  ;;  %v283_v32 = vpop.permute.xlu1 %282  ;;  %v278_v33 = vpop.permute.xlu0 %277  ;;  %v216_v35 = vsel %vm215_vm2, %v174_v26, %v214_v27  ;;  %v361_v13 = vadd.f32 %v346_v5, %v345_v6  ;;  %v843_v27 = vld [vmem:[#allocation8 + $0x50] sm:$0xff]  ;;  %v241_v6 = vld [vmem:[%s1752_s2 + $0x58] sm:$0xff] }
  0xcd   :  { %v202_v38 = vadd.f32 %v201_v30, %v200_v24  ;;  %v192_v40 = vadd.f32 %v191_v28, %v190_v22  ;;  %v218_v41 = vsel %vm217_vm3, %v180_v34, %v216_v35  ;;  %v348_v7 = vmul.f32 %v283_v32, %v233_v61  ;;  %v436_v22 = vld [vmem:[%s1754_s4 + $0x8] sm:$0xff]  ;;  %v844_v28 = vld [vmem:[#allocation8 + $0x58] sm:$0xff]  ;;  %v234_v34 = vld [vmem:[%s1752_s2 + $0x20] sm:$0xff] }
  0xce   :  { %v186_v36 = vadd.f32 %v185_v29, %v184_v23  ;;  %v196_v39 = vadd.f32 %v195_v31, %v194_v25  ;;  %v347_v8 = vmul.f32 %v278_v33, %v232_v2  ;;  %v362_v20 = vrot.slane %v361_v13, 4  ;;  %v435_v23 = vld [vmem:[%s1754_s4] sm:$0xff]  ;;  %v235_v33 = vld [vmem:[%s1752_s2 + $0x28] sm:$0xff]  ;;  %v237_v35 = vld [vmem:[%s1752_s2 + $0x38] sm:$0xff] }
  0xcf   :  { %v203_v42 = vrot.slane %v202_v38, 1  ;;  %v1163_v26 = vpack.c.bf16 %v842_v18, %v841_v17  ;;  %v440_v61 = vld [vmem:[%s1754_s4 + $0x28] sm:$0xff] }
  0xd0   :  { %v197_v43 = vrot.slane %v196_v39, 1  ;;  %v1575_v44 = vpop.permute.xlu1 %476  ;;  %v1577_v45 = vpop.permute.xlu0 %471  ;;  %v220_v46 = vsel %vm219_vm4, %v186_v36, %v218_v41  ;;  %v368_v14 = vadd.f32 %v348_v7, %v347_v8  ;;  %v363_v29 = vadd.f32 %v362_v20, %v361_v13  ;;  %v845_v41 = vld [vmem:[#allocation8 + $0x60] sm:$0xff]  ;;  %v240_v7 = vld [vmem:[%s1752_s2 + $0x50] sm:$0xff] }
  0xd1   :  { %v204_v50 = vadd.f32 %v203_v42, %v202_v38  ;;  %v222_v51 = vsel %vm221_vm5, %v192_v40, %v220_v46  ;;  %v550_v30 = vmul.f32 %v1575_v44, %v436_v22  ;;  %v549_v31 = vmul.f32 %v1577_v45, %v435_v23  ;;  %v236_v40 = vld [vmem:[%s1752_s2 + $0x30] sm:$0xff]  ;;  %v846_v42 = vld [vmem:[#allocation8 + $0x68] sm:$0xff] }
  0xd2   :  { %v198_v49 = vadd.f32 %v197_v43, %v196_v39  ;;  %v369_v21 = vrot.slane %v368_v14, 4  ;;  %v1166_v39 = vpack.c.bf16 %v844_v28, %v843_v27  ;;  %v438_v43 = vld [vmem:[%s1754_s4 + $0x18] sm:$0xff]  ;;  %v364_v44 = vrot.slane %v363_v29, 2  ;;  %v437_v46 = vld [vmem:[%s1754_s4 + $0x10] sm:$0xff] }
  0xd3   :  { %v565_v45 = vadd.f32 %v550_v30, %v549_v31 }
  0xd4   :  { %v1581_v52 = vpop.permute.xlu1 %486  ;;  %v1583_v53 = vpop.permute.xlu0 %481  ;;  %v224_v54 = vsel %vm223_vm6, %v198_v49, %v222_v51  ;;  %v370_v32 = vadd.f32 %v369_v21, %v368_v14  ;;  %v239_v49 = vld [vmem:[%s1752_s2 + $0x48] sm:$0xff]  ;;  %v365_v8 = vadd.f32 %v364_v44, %v363_v29 }
  0xd5   :  { %v226_v58 = vsel %vm225_vm7, %v204_v50, %v224_v54  ;;  %v238_v50 = vld [vmem:[%s1752_s2 + $0x40] sm:$0xff]  ;;  %v551_v2 = vmul.f32 %v1583_v53, %v437_v46 }
  0xd6   :  { %1030 = vmatmul.mubr.f32.vlgmr.msra.gmra.mrb[0].mxu0 %v226_v58  ;;  %v371_v51 = vrot.slane %v370_v32, 2  ;;  %v1169_v58 = vpack.c.bf16 %v846_v42, %v845_v41  ;;  %v443_v53 = vld [vmem:[%s1754_s4 + $0x40] sm:$0xff]  ;;  %v243_v42 = vld [vmem:[%s1752_s2 + $0x68] sm:$0xff] }
  0xd7   :  { %1152 = vmatpush3.bf16.msra.mxu0 %v1151_v55  ;;  %1099 = vmatprep.mubr.msk.f32.mxu0 %vm1287_vm0, %v1288_v37  ;;  %v839_v37 = vld [vmem:[#allocation8 + $0x30] sm:$0xff] }
  0xd8   :  { %v293_v62 = vpop.permute.xlu1 %292  ;;  %v288_v63 = vpop.permute.xlu0 %287  ;;  %1153 = vmatprep.subr.bf16.mxu0 %v1286_v1  ;;  %v1160_v19 = vpack.c.bf16 %v840_v12, %v839_v37  ;;  %v1172_v12 = vpack.c.bf16 %v848_v60, %v847_v59  ;;  %v372_v13 = vadd.f32 %v371_v51, %v370_v32 }
  0xd9   :  { %v350_v47 = vmul.f32 %v293_v62, %v235_v33  ;;  %v349_v48 = vmul.f32 %v288_v63, %v234_v34  ;;  %v439_v62 = vld [vmem:[%s1754_s4 + $0x20] sm:$0xff]  ;;  %v442_v63 = vld [vmem:[%s1754_s4 + $0x38] sm:$0xff] }
  0xdb   :  { %1155 = vmatpush3.bf16.msra.mxu0 %v1154_v0  ;;  %v552_v0 = vmul.f32 %v1581_v52, %v438_v43  ;;  %v375_v37 = vadd.f32 %v350_v47, %v349_v48  ;;  %v444_v52 = vld [vmem:[%s1754_s4 + $0x48] sm:$0xff]  ;;  %v242_v43 = vld [vmem:[%s1752_s2 + $0x60] sm:$0xff] }
  0xdc   :  { %v1602_v9 = vpop.permute.xlu1 %496  ;;  %v1604_v10 = vpop.permute.xlu0 %491  ;;  %1156 = vmatprep.subr.bf16.mxu0 %v1286_v1 }
  0xdd   :  { %v554_v14 = vmul.f32 %v1602_v9, %v440_v61  ;;  %v572_v23 = vadd.f32 %v552_v0, %v551_v2  ;;  %v446_v9 = vld [vmem:[%s1754_s4 + $0x58] sm:$0xff]  ;;  %v376_v29 = vrot.slane %v375_v37, 4 }
  0xdf   :  { %1158 = vmatpush3.bf16.msra.mxu0 %v1157_v11  ;;  %v566_v11 = vrot.slane %v565_v45, 4  ;;  %v377_v44 = vadd.f32 %v376_v29, %v375_v37 }
  0xe0   :  { %v303_v15 = vpop.permute.xlu1 %302  ;;  %v298_v16 = vpop.permute.xlu0 %297  ;;  %1159 = vmatprep.subr.bf16.mxu0 %v1286_v1 }
  0xe1   :  { %v352_v54 = vmul.f32 %v303_v15, %v237_v35  ;;  %v351_v55 = vmul.f32 %v298_v16, %v236_v40  ;;  %v553_v15 = vmul.f32 %v1604_v10, %v439_v62  ;;  %v445_v10 = vld [vmem:[%s1754_s4 + $0x50] sm:$0xff]  ;;  %v567_v30 = vadd.f32 %v566_v11, %v565_v45  ;;  %v448_v62 = vld [vmem:[%s1754_s4 + $0x68] sm:$0xff] }
  0xe3   :  { %1161 = vmatpush3.bf16.msra.mxu0 %v1160_v19  ;;  %v382_v16 = vadd.f32 %v352_v54, %v351_v55  ;;  %v568_v47 = vrot.slane %v567_v30, 2 }
  0xe4   :  { %v1614_v24 = vpop.permute.xlu1 %506  ;;  %v1616_v25 = vpop.permute.xlu0 %501  ;;  %1162 = vmatprep.subr.bf16.mxu0 %v1286_v1 }
  0xe5   :  { %v556_v18 = vmul.f32 %v1614_v24, %v442_v63  ;;  %v555_v20 = vmul.f32 %v1616_v25, %v441_v3  ;;  %v579_v25 = vadd.f32 %v554_v14, %v553_v15  ;;  %v383_v31 = vrot.slane %v382_v16, 4 }
  0xe6   :  { %v378_v63 = vrot.slane %v377_v44, 2 }
  0xe7   :  { %1164 = vmatpush3.bf16.msra.mxu0 %v1163_v26  ;;  %v586_v34 = vadd.f32 %v556_v18, %v555_v20  ;;  %v580_v48 = vrot.slane %v579_v25, 4 }
  0xe8   :  { %v313_v36 = vpop.permute.xlu1 %312  ;;  %v308_v38 = vpop.permute.xlu0 %307  ;;  %1165 = vmatprep.subr.bf16.mxu0 %v1286_v1  ;;  %v379_v18 = vadd.f32 %v378_v63, %v377_v44 }
  0xe9   :  { %v354_v4 = vmul.f32 %v313_v36, %v239_v49  ;;  %v353_v5 = vmul.f32 %v308_v38, %v238_v50  ;;  %v366_v38 = vrot.slane %v365_v8, 1  ;;  %v384_v49 = vadd.f32 %v383_v31, %v382_v16 }
  0xea   :  { %v587_v55 = vrot.slane %v586_v34, 4 }
  0xeb   :  { %1167 = vmatpush3.bf16.msra.mxu0 %v1166_v39  ;;  %v389_v26 = vadd.f32 %v354_v4, %v353_v5  ;;  %v573_v39 = vrot.slane %v572_v23, 4  ;;  %v447_v4 = vld [vmem:[%s1754_s4 + $0x60] sm:$0xff]  ;;  %v1696_v5 = vadd.f32 %v568_v47, %v567_v30 }
  0xec   :  { %v517_v56 = vpop.permute.xlu1 %516  ;;  %v512_v57 = vpop.permute.xlu0 %511  ;;  %1168 = vmatprep.subr.bf16.mxu0 %v1286_v1 }
  0xed   :  { %v558_v27 = vmul.f32 %v517_v56, %v444_v52  ;;  %v557_v28 = vmul.f32 %v512_v57, %v443_v53  ;;  %v390_v40 = vrot.slane %v389_v26, 4  ;;  %v574_v59 = vadd.f32 %v573_v39, %v572_v23 }
  0xee   :  { %v588_v52 = vadd.f32 %v587_v55, %v586_v34  ;;  %v570_v23 = vrot.slane %v1696_v5, 1  ;;  %v450_v34 = vld [vmem:[%s1754_s4 + $0x78] sm:$0xff] }
  0xef   :  { %1170 = vmatpush3.bf16.msra.mxu0 %v1169_v58  ;;  %v593_v41 = vadd.f32 %v558_v27, %v557_v28  ;;  %v367_v58 = vadd.f32 %v366_v38, %v365_v8  ;;  %v391_v60 = vadd.f32 %v390_v40, %v389_v26 }
  0xf0   :  { %v323_v19 = vpop.permute.xlu1 %322  ;;  %v318_v17 = vpop.permute.xlu0 %317  ;;  %1171 = vmatprep.subr.bf16.mxu0 %v1286_v1  ;;  %v373_v1 = vrot.slane %v372_v13, 1  ;;  %v589_v29 = vrot.slane %v588_v52, 2 }
  0xf1   :  { %v356_v21 = vmul.f32 %v323_v19, %v241_v6  ;;  %v355_v22 = vmul.f32 %v318_v17, %v240_v7  ;;  %v594_v61 = vrot.slane %v593_v41, 4  ;;  %v581_v6 = vadd.f32 %v580_v48, %v579_v25  ;;  %v245_v19 = vld [vmem:[%s1752_s2 + $0x78] sm:$0xff]  ;;  %v244_v17 = vld [vmem:[%s1752_s2 + $0x70] sm:$0xff] }
  0xf2   :  { %v374_v54 = vadd.f32 %v373_v1, %v372_v13  ;;  %v385_v7 = vrot.slane %v384_v49, 2  ;;  %v575_v13 = vrot.slane %v574_v59, 2  ;;  %v392_v14 = vrot.slane %v391_v60, 2 }
  0xf3   :  { %v396_v24 = vadd.f32 %v356_v21, %v355_v22  ;;  %1173 = vmatpush3.bf16.msra.mxu0 %v1172_v12  ;;  %v595_v15 = vadd.f32 %v594_v61, %v593_v41  ;;  %v582_v26 = vrot.slane %v581_v6, 2  ;;  %v590_v47 = vadd.f32 %v589_v29, %v588_v52 }
  0xf4   :  { %v527_v32 = vpop.permute.xlu1 %526  ;;  %v522_v33 = vpop.permute.xlu0 %521  ;;  %v1699_v37 = vsel %vm213_vm1, %v374_v54, %v367_v58  ;;  %v386_v27 = vadd.f32 %v385_v7, %v384_v49  ;;  %v576_v31 = vadd.f32 %v575_v13, %v574_v59  ;;  %v571_v7 = vadd.f32 %v570_v23, %v1696_v5 }
  0xf5   :  { %v560_v35 = vmul.f32 %v527_v32, %v446_v9  ;;  %v559_v36 = vmul.f32 %v522_v33, %v445_v10  ;;  %v397_v45 = vrot.slane %v396_v24, 4  ;;  %v393_v32 = vadd.f32 %v392_v14, %v391_v60 }
  0xf6   :  { %v596_v33 = vrot.slane %v595_v15, 2  ;;  %v583_v41 = vadd.f32 %v582_v26, %v581_v6 }
  0xf7   :  { %v600_v46 = vadd.f32 %v560_v35, %v559_v36  ;;  %v398_v0 = vadd.f32 %v397_v45, %v396_v24  ;;  %v449_v35 = vld [vmem:[%s1754_s4 + $0x70] sm:$0xff]  ;;  %v380_v36 = vrot.slane %v379_v18, 1  ;;  %v394_v54 = vrot.slane %v393_v32, 1 }
  0xf8   :  { %v333_v50 = vpop.permute.xlu1 %332  ;;  %v328_v51 = vpop.permute.xlu0 %327  ;;  %v597_v55 = vadd.f32 %v596_v33, %v595_v15 }
  0xf9   :  { %v358_v56 = vmul.f32 %v333_v50, %v243_v42  ;;  %v357_v57 = vmul.f32 %v328_v51, %v242_v43  ;;  %v601_v2 = vrot.slane %v600_v46, 4  ;;  %v399_v20 = vrot.slane %v398_v0, 2 }
  0xfa   :  { %v387_v42 = vrot.slane %v386_v27, 1  ;;  %v577_v51 = vrot.slane %v576_v31, 1  ;;  %v381_v61 = vadd.f32 %v380_v36, %v379_v18  ;;  %v598_v52 = vrot.slane %v597_v55, 1  ;;  %v943_v36 = vld [vmem:[%s1757_s7] ss:$0 sm:$0xff]  ;;  %s1252_s7 = scalar_lea.vmem %s934_s25, 384 }
  0xfb   :  { %v403_v3 = vadd.f32 %v358_v56, %v357_v57  ;;  %v602_v21 = vadd.f32 %v601_v2, %v600_v46  ;;  %v400_v38 = vadd.f32 %v399_v20, %v398_v0  ;;  %p1253_p10 = scmp.ne.s32.totalorder %s934_s25, %s1252_s7  ;;  %p1258_p12 = scmp.lt.s32.totalorder %s1252_s7, %s1252_s7 }
  0xfc   :  { %v537_v8 = vpop.permute.xlu1 %536  ;;  %v532_v11 = vpop.permute.xlu0 %531  ;;  %v388_v2 = vadd.f32 %v387_v42, %v386_v27  ;;  %v599_v23 = vadd.f32 %v598_v52, %v597_v55 }
  0xfd   :  { %v404_v53 = vrot.slane %v403_v3, 4  ;;  %v562_v12 = vmul.f32 %v537_v8, %v448_v62  ;;  %v561_v16 = vmul.f32 %v532_v11, %v447_v4  ;;  %v603_v39 = vrot.slane %v602_v21, 2  ;;  %p1259_p13 = por %p1258_p12, %p1257_p11 }
  0xfe   :  { %v401_v57 = vrot.slane %v400_v38, 1  ;;  %v584_v62 = vrot.slane %v583_v41, 1  ;;  %v578_v8 = vadd.f32 %v577_v51, %v576_v31  ;;  %v395_v11 = vadd.f32 %v394_v54, %v393_v32 }
  0xff   :  { %v405_v22 = vadd.f32 %v404_v53, %v403_v3  ;;  %v607_v28 = vadd.f32 %v562_v12, %v561_v16  ;;  %v604_v58 = vadd.f32 %v603_v39, %v602_v21  ;;  %v591_v3 = vrot.slane %v590_v47, 1  ;;  %p1260_p0 = pnand %p1259_p13, %p1253_p10 }
 0x100   :  { %v343_v9 = vpop.permute.xlu1 %342  ;;  %v338_v10 = vpop.permute.xlu0 %337  ;;  %v402_v53 = vadd.f32 %v401_v57, %v400_v38  ;;  %v585_v15 = vadd.f32 %v584_v62, %v583_v41  ;;  %v629_v5 = vsel %vm213_vm1, %v578_v8, %v571_v7  ;;  %v944_v41 = vld [vmem:[%s1759_s9] ss:$0 sm:$0xff] }
 0x101   :  { %v406_v24 = vrot.slane %v405_v22, 2  ;;  %v360_v30 = vmul.f32 %v343_v9, %v245_v19  ;;  %v359_v25 = vmul.f32 %v338_v10, %v244_v17  ;;  %v608_v1 = vrot.slane %v607_v28, 4 }
 0x102   :  { %v605_v12 = vrot.slane %v604_v58, 1  ;;  %v426_v17 = vsel %vm215_vm2, %v381_v61, %v1699_v37  ;;  %v592_v18 = vadd.f32 %v591_v3, %v590_v47  ;;  %v630_v29 = vsel %vm215_vm2, %v585_v15, %v629_v5 }
 0x103   :  { %v410_v40 = vadd.f32 %v360_v30, %v359_v25  ;;  %v407_v43 = vadd.f32 %v406_v24, %v405_v22  ;;  %v609_v44 = vadd.f32 %v608_v1, %v607_v28  ;;  %v427_v22 = vsel %vm217_vm3, %v388_v2, %v426_v17 }
 0x104   :  { %v547_v45 = vpop.permute.xlu1 %546  ;;  %v542_v46 = vpop.permute.xlu0 %541  ;;  %v428_v26 = vsel %vm219_vm4, %v395_v11, %v427_v22  ;;  %v606_v27 = vadd.f32 %v605_v12, %v604_v58  ;;  %v631_v31 = vsel %vm217_vm3, %v592_v18, %v630_v29 }
 0x105   :  { %v411_v48 = vrot.slane %v410_v40, 4  ;;  %v564_v49 = vmul.f32 %v547_v45, %v450_v34  ;;  %v563_v50 = vmul.f32 %v542_v46, %v449_v35  ;;  %v610_v56 = vrot.slane %v609_v44, 2  ;;  %v945_v45 = vld [vmem:[%s1761_s11] ss:$0 sm:$0xff] }
 0x106   :  { %v408_v63 = vrot.slane %v407_v43, 1  ;;  %v429_v10 = vsel %vm221_vm5, %v402_v53, %v428_v26  ;;  %v632_v32 = vsel %vm219_vm4, %v599_v23, %v631_v31 }
 0x107   :  { %v412_v59 = vadd.f32 %v411_v48, %v410_v40  ;;  %v614_v60 = vadd.f32 %v564_v49, %v563_v50  ;;  %v611_v0 = vadd.f32 %v610_v56, %v609_v44  ;;  %v633_v1 = vsel %vm221_vm5, %v606_v27, %v632_v32 }
 0x108   :  { %v409_v19 = vadd.f32 %v408_v63, %v407_v43 }
 0x109   :  { %v413_v4 = vrot.slane %v412_v59, 2  ;;  %v615_v6 = vrot.slane %v614_v60, 4  ;;  %v612_v16 = vrot.slane %v611_v0, 1 }
 0x10a   :  { %v430_v37 = vsel %vm223_vm6, %v409_v19, %v429_v10 }
 0x10b   :  { %v414_v13 = vadd.f32 %v413_v4, %v412_v59  ;;  %v616_v14 = vadd.f32 %v615_v6, %v614_v60  ;;  %v613_v24 = vadd.f32 %v612_v16, %v611_v0 }
 0x10d   :  { %v617_v20 = vrot.slane %v616_v14, 2  ;;  %v415_v21 = vrot.slane %v414_v13, 1  ;;  %v634_v34 = vsel %vm223_vm6, %v613_v24, %v633_v1 }
 0x10f   :  { %v618_v28 = vadd.f32 %v617_v20, %v616_v14  ;;  %v416_v9 = vadd.f32 %v415_v21, %v414_v13 }
 0x111   :  { %v619_v30 = vrot.slane %v618_v28, 1  ;;  %v431_v25 = vsel %vm225_vm7, %v416_v9, %v430_v37 }
 0x112   :  { %1065 = vmatmul.mubr.f32.vlgmr.msra.gmra.mrb[0].mxu1 %v431_v25 }
 0x113   :  { %v620_v33 = vadd.f32 %v619_v30, %v618_v28 }
 0x115   :  { %v635_v35 = vsel %vm225_vm7, %v620_v33, %v634_v34 }
 0x116   :  { %1100 = vmatmul.mubr.f32.vlgmr.msra.gmra.mrb[2].mxu0 %v635_v35 }
 0x1a9   :  { %v732_v38 = vpop.f32.mrb[0].mxu0 }
 0x1aa   :  { %v733_v39 = vadd.f32 %v943_v36, %v732_v38  ;;  %v1031_v40 = vpop.f32.mrb[1].mxu0 }
 0x1ac   :  { %736 = vst [vmem:[#allocation9] sm:$0xff] %v733_v39 }
 0x1e5   :  { %v827_v42 = vpop.f32.mrb[0].mxu1 }
 0x1e6   :  { %v828_v43 = vadd.f32 %v944_v41, %v827_v42  ;;  %v1066_v44 = vpop.f32.mrb[1].mxu1 }
 0x1e8   :  { %831 = vst [vmem:[#allocation9 + $0x8] sm:$0xff] %v828_v43 }
 0x1e9   :  { %v922_v46 = vpop.f32.mrb[2].mxu0 }
 0x1ea   :  { %v923_v47 = vadd.f32 %v945_v45, %v922_v46  ;;  %v1101_v48 = vpop.f32.mrb[3].mxu0 }
 0x1ec   :  { %926 = vst [vmem:[#allocation9 + $0x10] sm:$0xff] %v923_v47 }
 0x1ed   :  { %1263 = shalt.err (!%p1260_p0)
}
 0x1ee   :  { %s1264_s27 = scalar_lea.hbm %s1762_s12, 384 }
 0x1ef   :  { %p1265_p1 = scmp.ne.s32.totalorder %s1762_s12, %s1264_s27  ;;  %p1268_p2 = scmp.lt.u32.totalorder %s1264_s27, %s1762_s12 }
 0x1f1   :  { %p1270_p3 = pnand %p1268_p2, %p1265_p1 }
 0x1f3   :  { %1273 = shalt.err (!%p1270_p3)
}
 0x1f4   :  { %936 = dma.vmem_to_hbm [thread:$0]  %s934_s25, 384, %s1762_s12, [#allocation5]  }
 0x1f5   :  { %1278 = dma.done.wait [#allocation5], 384  }
 0x1f6   :  { %1279 = vsyncadd [#allocation5], 4294966912 }
 0x1f7   :  { %940 = vsyncpa [#allocation4], 1 }
 0x1f8   :  { %941 = vsyncpa [#allocation7], 1 }
 0x1f9   :  { %942 = vsyncpa [#allocation5], 1 }

// kernel: tpu_custom_call.1
= control target key start
LH: loop header
LB: loop body
LE: loop exit
PB: predicated region body
PF: predicated region fallthrough
CT: control target
= control target key end

     0   :  { %17 = vsyncpa [#allocation4], 0  ;;  %s1750_s0 = inlined_call_operand.vmem [shape: f32[8,8,128], index: 0, kind: input, shape index: {}]   ;;  %s1751_s1 = inlined_call_operand.vmem [shape: f32[8,8,1], index: 1, kind: input, shape index: {}]   ;;  %s1752_s2 = inlined_call_operand.vmem [shape: f32[8,16,128], index: 2, kind: input, shape index: {}]   ;;  %s1753_s3 = inlined_call_operand.vmem [shape: f32[8,16,1], index: 3, kind: input, shape index: {}]   ;;  %s1754_s4 = inlined_call_operand.vmem [shape: f32[8,16,128], index: 4, kind: input, shape index: {}]   ;;  %s1755_s5 = inlined_call_operand.vmem [shape: f32[8,16,1], index: 5, kind: input, shape index: {}]   ;;  %s1756_s6 = inlined_call_operand.hbm [shape: f32[128,128], index: 6, kind: input, shape index: {}]   ;;  %s1757_s7 = inlined_call_operand.vmem [shape: f32[1,128], index: 7, kind: input, shape index: {}]   ;;  %s1758_s8 = inlined_call_operand.hbm [shape: f32[128,128], index: 8, kind: input, shape index: {}]   ;;  %s1759_s9 = inlined_call_operand.vmem [shape: f32[1,128], index: 9, kind: input, shape index: {}]   ;;  %s1760_s10 = inlined_call_operand.hbm [shape: f32[128,128], index: 10, kind: input, shape index: {}]   ;;  %s1761_s11 = inlined_call_operand.vmem [shape: f32[1,128], index: 11, kind: input, shape index: {}]   ;;  %s1762_s12 = inlined_call_operand.hbm [shape: f32[8,384], index: 12, kind: output, shape index: {}]  }
   0x1   :  { %18 = vsyncpa [#allocation7], 0 }
   0x2   :  { %19 = vsyncpa [#allocation5], 0  ;;  %s1280_s21 = smov [#allocation6]   ;;  %s1281_s23 = smov [#allocation3]  }
   0x3   :  { %s51_s22 = sshll.u32 %s1280_s21, 4  ;;  %s37_s24 = sshll.u32 %s1281_s23, 4  ;;  %s52_s22 = int_to_ptr.vmem [resolvable:$true] %s51_s22  ;;  %s1355_s24 = int_to_ptr.vmem [resolvable:$true] %s37_s24 }
   0x4   :  { %s1186_s27 = scalar_lea.hbm %s1758_s8, 2048 }
   0x5   :  { %p1187_p0 = scmp.ne.s32.totalorder %s1758_s8, %s1186_s27  ;;  %p1190_p1 = scmp.lt.u32.totalorder %s1186_s27, %s1758_s8 }
   0x7   :  { %p1192_p2 = pnand %p1190_p1, %p1187_p0 }
   0x9   :  { %1195 = shalt.err (!%p1192_p2)
}
   0xa   :  { %s1196_s14 = scalar_lea.vmem %s52_s22, 2048  ;;  %p1201_p4 = scmp.lt.s32.totalorder %s52_s22, %s52_s22 }
   0xb   :  { %p1197_p3 = scmp.ne.s32.totalorder %s52_s22, %s1196_s14  ;;  %p1202_p5 = scmp.lt.s32.totalorder %s1196_s14, %s1196_s14 }
   0xd   :  { %p1203_p6 = por %p1202_p5, %p1201_p4 }
   0xf   :  { %p1204_p7 = pnand %p1203_p6, %p1197_p3 }
  0x11   :  { %1207 = shalt.err (!%p1204_p7)
}
  0x12   :  { %s1282_s15 = smov 128   ;;  %s1283_s16 = smov 8  }
  0x13   :  { %57 = dma.hbm_to_vmem [thread:$0]  %s1758_s8, 2048, %s52_s22, [#allocation7], %s1282_s15, %s1282_s15, %s1283_s16  }
  0x14   :  { %s1208_s21 = scalar_lea.hbm %s1756_s6, 2048 }
  0x15   :  { %p1209_p8 = scmp.ne.s32.totalorder %s1756_s6, %s1208_s21  ;;  %p1212_p9 = scmp.lt.u32.totalorder %s1208_s21, %s1756_s6 }
  0x17   :  { %p1214_p10 = pnand %p1212_p9, %p1209_p8 }
  0x19   :  { %1217 = shalt.err (!%p1214_p10)
}
  0x1a   :  { %s1218_s28 = scalar_lea.vmem %s1355_s24, 2048  ;;  %p1223_p12 = scmp.lt.s32.totalorder %s1355_s24, %s1355_s24 }
  0x1b   :  { %p1219_p11 = scmp.ne.s32.totalorder %s1355_s24, %s1218_s28  ;;  %p1224_p13 = scmp.lt.s32.totalorder %s1218_s28, %s1218_s28 }
  0x1d   :  { %p1225_p0 = por %p1224_p13, %p1223_p12 }
  0x1f   :  { %p1226_p1 = pnand %p1225_p0, %p1219_p11 }
  0x21   :  { %1229 = shalt.err (!%p1226_p1)
}
  0x22   :  { %43 = dma.hbm_to_vmem [thread:$0]  %s1756_s6, 2048, %s1355_s24, [#allocation4], %s1282_s15, %s1282_s15, %s1283_s16  }
  0x23   :  { %s1284_s29 = smov [#allocation8]   ;;  %s1230_s17 = scalar_lea.hbm %s1760_s10, 2048 }
  0x24   :  { %s65_s30 = sshll.u32 %s1284_s29, 4  ;;  %p1231_p2 = scmp.ne.s32.totalorder %s1760_s10, %s1230_s17  ;;  %s66_s30 = int_to_ptr.vmem [resolvable:$true] %s65_s30 }
  0x25   :  { %p1234_p3 = scmp.lt.u32.totalorder %s1230_s17, %s1760_s10 }
  0x27   :  { %p1236_p4 = pnand %p1234_p3, %p1231_p2 }
  0x29   :  { %1239 = shalt.err (!%p1236_p4)
}
  0x2a   :  { %s1240_s23 = scalar_lea.vmem %s66_s30, 2048  ;;  %p1245_p6 = scmp.lt.s32.totalorder %s66_s30, %s66_s30 }
  0x2b   :  { %p1241_p5 = scmp.ne.s32.totalorder %s66_s30, %s1240_s23  ;;  %p1246_p7 = scmp.lt.s32.totalorder %s1240_s23, %s1240_s23 }
  0x2d   :  { %p1247_p8 = por %p1246_p7, %p1245_p6 }
  0x2f   :  { %p1248_p9 = pnand %p1247_p8, %p1241_p5 }
  0x31   :  { %1251 = shalt.err (!%p1248_p9)
}
  0x32   :  { %71 = dma.hbm_to_vmem [thread:$0]  %s1760_s10, 2048, %s66_s30, [#allocation7], %s1282_s15, %s1282_s15, %s1283_s16  }
  0x33   :  { %1274 = dma.done.wait [#allocation4], 2048  }
  0x34   :  { %1275 = vsyncadd [#allocation4], 4294965248 }
  0x35   :  { %1276 = dma.done.wait [#allocation7], 4096  }
  0x36   :  { %1277 = vsyncadd [#allocation7], 4294963200  ;;  %v1285_v0 = vmov 0   ;;  %v1286_v1 = vmov 0.0|0.0   ;;  %v102_v2 = vld [vmem:[%s1751_s1 + $0x10] sm:$0xff]  ;;  %v100_v3 = vld [vmem:[%s1751_s1] sm:$0xff] }
  0x37   :  { %1185 = vset.pattern.permute.xlu1 %v1285_v0  ;;  %1184 = vset.pattern.permute.xlu0 %v1285_v0  ;;  %v103_v4 = vld [vmem:[%s1751_s1 + $0x18] sm:$0xff]  ;;  %v101_v5 = vld [vmem:[%s1751_s1 + $0x8] sm:$0xff]  ;;  %v104_v7 = vld [vmem:[%s1751_s1 + $0x20] sm:$0xff]  ;;  %vm1287_vm0 = vmmov 0   ;;  %v1288_v37 = vmov 0.0   ;;  %vm213_vm1 = vcmask 1041409  }
  0x38   :  { %1102 = vmatprep.subr.bf16.mxu0 %v1286_v1  ;;  %1126 = vmatprep.subr.bf16.mxu1 %v1286_v1  ;;  %v105_v6 = vld [vmem:[%s1751_s1 + $0x28] sm:$0xff]  ;;  %v107_v8 = vld [vmem:[%s1751_s1 + $0x38] sm:$0xff]  ;;  %v106_v9 = vld [vmem:[%s1751_s1 + $0x30] sm:$0xff]  ;;  %vm215_vm2 = vcmask 1042434   ;;  %vm217_vm3 = vcmask 1043459   ;;  %vm219_vm4 = vcmask 1044484  }
  0x39   :  { %121 = vperm.xlu1 %1185, %v102_v2   ;;  %111 = vperm.xlu0 %1184, %v100_v3   ;;  %v643_v10 = vld [vmem:[#allocation3] sm:$0xff]  ;;  %v644_v11 = vld [vmem:[#allocation3 + $0x8] sm:$0xff]  ;;  %v645_v15 = vld [vmem:[#allocation3 + $0x10] sm:$0xff]  ;;  %vm221_vm5 = vcmask 1045509   ;;  %vm223_vm6 = vcmask 1046534   ;;  %vm225_vm7 = vcmask 1047559  }
  0x3a   :  { %v249_v12 = vld [vmem:[%s1753_s3 + $0x8] sm:$0xff]  ;;  %v248_v13 = vld [vmem:[%s1753_s3] sm:$0xff]  ;;  %v1103_v14 = vpack.c.bf16 %v644_v11, %v643_v10  ;;  %v646_v16 = vld [vmem:[#allocation3 + $0x18] sm:$0xff]  ;;  %1029 = vmatprep.mubr.msk.f32.mxu0 %vm1287_vm0, %v1288_v37  ;;  %1064 = vmatprep.mubr.msk.f32.mxu1 %vm1287_vm0, %v1288_v37  ;;  %s1289_s24 = smov [#allocation9]  }
  0x3b   :  { %v1106_v17 = vpack.c.bf16 %v646_v16, %v645_v15  ;;  %v647_v18 = vld [vmem:[#allocation3 + $0x20] sm:$0xff]  ;;  %v648_v19 = vld [vmem:[#allocation3 + $0x28] sm:$0xff]  ;;  %v251_v20 = vld [vmem:[%s1753_s3 + $0x18] sm:$0xff]  ;;  %s933_s25 = sshll.u32 %s1289_s24, 4  ;;  %s934_s25 = int_to_ptr.vmem [resolvable:$true] %s933_s25 }
  0x3c   :  { %1104 = vmatpush3.bf16.msra.mxu0 %v1103_v14  ;;  %v250_v21 = vld [vmem:[%s1753_s3 + $0x10] sm:$0xff]  ;;  %v1109_v22 = vpack.c.bf16 %v648_v19, %v647_v18  ;;  %v650_v24 = vld [vmem:[#allocation3 + $0x38] sm:$0xff]  ;;  %v453_v25 = vld [vmem:[%s1755_s5 + $0x8] sm:$0xff]  ;;  %p1257_p11 = scmp.lt.s32.totalorder %s934_s25, %s934_s25 }
  0x3d   :  { %126 = vperm.xlu1 %1185, %v103_v4   ;;  %116 = vperm.xlu0 %1184, %v101_v5   ;;  %v649_v23 = vld [vmem:[#allocation3 + $0x30] sm:$0xff]  ;;  %v452_v26 = vld [vmem:[%s1755_s5] sm:$0xff]  ;;  %v652_v29 = vld [vmem:[#allocation3 + $0x48] sm:$0xff] }
  0x3e   :  { %1105 = vmatprep.subr.bf16.mxu0 %v1286_v1  ;;  %v1112_v27 = vpack.c.bf16 %v650_v24, %v649_v23  ;;  %v651_v28 = vld [vmem:[#allocation3 + $0x40] sm:$0xff]  ;;  %v455_v30 = vld [vmem:[%s1755_s5 + $0x18] sm:$0xff]  ;;  %v454_v31 = vld [vmem:[%s1755_s5 + $0x10] sm:$0xff] }
  0x3f   :  { %v1115_v32 = vpack.c.bf16 %v652_v29, %v651_v28  ;;  %v653_v33 = vld [vmem:[#allocation3 + $0x50] sm:$0xff]  ;;  %v654_v34 = vld [vmem:[#allocation3 + $0x58] sm:$0xff]  ;;  %v253_v35 = vld [vmem:[%s1753_s3 + $0x28] sm:$0xff] }
  0x40   :  { %1107 = vmatpush3.bf16.msra.mxu0 %v1106_v17  ;;  %v252_v36 = vld [vmem:[%s1753_s3 + $0x20] sm:$0xff]  ;;  %v1118_v38 = vpack.c.bf16 %v654_v34, %v653_v33  ;;  %v656_v40 = vld [vmem:[#allocation3 + $0x68] sm:$0xff]  ;;  %v657_v44 = vld [vmem:[#allocation3 + $0x70] sm:$0xff] }
  0x41   :  { %136 = vperm.xlu1 %1185, %v105_v6   ;;  %131 = vperm.xlu0 %1184, %v104_v7   ;;  %v655_v39 = vld [vmem:[#allocation3 + $0x60] sm:$0xff]  ;;  %v457_v41 = vld [vmem:[%s1755_s5 + $0x28] sm:$0xff]  ;;  %v658_v45 = vld [vmem:[#allocation3 + $0x78] sm:$0xff] }
  0x42   :  { %1108 = vmatprep.subr.bf16.mxu0 %v1286_v1  ;;  %v456_v42 = vld [vmem:[%s1755_s5 + $0x20] sm:$0xff]  ;;  %v1121_v43 = vpack.c.bf16 %v656_v40, %v655_v39  ;;  %v255_v46 = vld [vmem:[%s1753_s3 + $0x38] sm:$0xff]  ;;  %v254_v47 = vld [vmem:[%s1753_s3 + $0x30] sm:$0xff]  ;;  %v1124_v48 = vpack.c.bf16 %v658_v45, %v657_v44 }
  0x43   :  { %v459_v49 = vld [vmem:[%s1755_s5 + $0x38] sm:$0xff]  ;;  %v458_v50 = vld [vmem:[%s1755_s5 + $0x30] sm:$0xff]  ;;  %v257_v51 = vld [vmem:[%s1753_s3 + $0x48] sm:$0xff] }
  0x44   :  { %1110 = vmatpush3.bf16.msra.mxu0 %v1109_v22  ;;  %v256_v52 = vld [vmem:[%s1753_s3 + $0x40] sm:$0xff]  ;;  %v461_v53 = vld [vmem:[%s1755_s5 + $0x48] sm:$0xff]  ;;  %v259_v55 = vld [vmem:[%s1753_s3 + $0x58] sm:$0xff] }
  0x45   :  { %146 = vperm.xlu1 %1185, %v107_v8   ;;  %141 = vperm.xlu0 %1184, %v106_v9   ;;  %v460_v54 = vld [vmem:[%s1755_s5 + $0x40] sm:$0xff]  ;;  %v258_v56 = vld [vmem:[%s1753_s3 + $0x50] sm:$0xff]  ;;  %v463_v57 = vld [vmem:[%s1755_s5 + $0x58] sm:$0xff] }
  0x46   :  { %1111 = vmatprep.subr.bf16.mxu0 %v1286_v1  ;;  %v462_v58 = vld [vmem:[%s1755_s5 + $0x50] sm:$0xff]  ;;  %v738_v59 = vld [vmem:[#allocation6] sm:$0xff]  ;;  %v739_v60 = vld [vmem:[#allocation6 + $0x8] sm:$0xff] }
  0x47   :  { %v1127_v61 = vpack.c.bf16 %v739_v60, %v738_v59  ;;  %v261_v62 = vld [vmem:[%s1753_s3 + $0x68] sm:$0xff]  ;;  %v260_v63 = vld [vmem:[%s1753_s3 + $0x60] sm:$0xff]  ;;  %v740_v0 = vld [vmem:[#allocation6 + $0x10] sm:$0xff] }
  0x48   :  { %1113 = vmatpush3.bf16.msra.mxu0 %v1112_v27  ;;  %v741_v2 = vld [vmem:[#allocation6 + $0x18] sm:$0xff]  ;;  %v465_v4 = vld [vmem:[%s1755_s5 + $0x68] sm:$0xff]  ;;  %v464_v5 = vld [vmem:[%s1755_s5 + $0x60] sm:$0xff] }
  0x49   :  { %272 = vperm.xlu1 %1185, %v249_v12   ;;  %267 = vperm.xlu0 %1184, %v248_v13   ;;  %v1130_v3 = vpack.c.bf16 %v741_v2, %v740_v0  ;;  %v742_v6 = vld [vmem:[#allocation6 + $0x20] sm:$0xff]  ;;  %v743_v7 = vld [vmem:[#allocation6 + $0x28] sm:$0xff]  ;;  %v263_v9 = vld [vmem:[%s1753_s3 + $0x78] sm:$0xff] }
  0x4a   :  { %1114 = vmatprep.subr.bf16.mxu0 %v1286_v1  ;;  %1128 = vmatpush3.bf16.msra.mxu1 %v1127_v61  ;;  %v1133_v8 = vpack.c.bf16 %v743_v7, %v742_v6  ;;  %v262_v10 = vld [vmem:[%s1753_s3 + $0x70] sm:$0xff]  ;;  %v745_v12 = vld [vmem:[#allocation6 + $0x38] sm:$0xff]  ;;  %v746_v16 = vld [vmem:[#allocation6 + $0x40] sm:$0xff] }
  0x4b   :  { %1129 = vmatprep.subr.bf16.mxu1 %v1286_v1  ;;  %v744_v11 = vld [vmem:[#allocation6 + $0x30] sm:$0xff]  ;;  %v467_v14 = vld [vmem:[%s1755_s5 + $0x78] sm:$0xff]  ;;  %v747_v17 = vld [vmem:[#allocation6 + $0x48] sm:$0xff] }
  0x4c   :  { %1116 = vmatpush3.bf16.msra.mxu0 %v1115_v32  ;;  %v1136_v13 = vpack.c.bf16 %v745_v12, %v744_v11  ;;  %v466_v15 = vld [vmem:[%s1755_s5 + $0x70] sm:$0xff]  ;;  %v1139_v18 = vpack.c.bf16 %v747_v17, %v746_v16  ;;  %v750_v22 = vld [vmem:[#allocation6 + $0x60] sm:$0xff]  ;;  %v751_v23 = vld [vmem:[#allocation6 + $0x68] sm:$0xff] }
  0x4d   :  { %282 = vperm.xlu1 %1185, %v251_v20   ;;  %277 = vperm.xlu0 %1184, %v250_v21   ;;  %v748_v19 = vld [vmem:[#allocation6 + $0x50] sm:$0xff]  ;;  %v749_v20 = vld [vmem:[#allocation6 + $0x58] sm:$0xff]  ;;  %v1145_v24 = vpack.c.bf16 %v751_v23, %v750_v22  ;;  %v90_v29 = vld [vmem:[%s1750_s0] sm:$0xff] }
  0x4e   :  { %1117 = vmatprep.subr.bf16.mxu0 %v1286_v1  ;;  %1131 = vmatpush3.bf16.msra.mxu1 %v1130_v3  ;;  %v1142_v21 = vpack.c.bf16 %v749_v20, %v748_v19  ;;  %v92_v28 = vld [vmem:[%s1750_s0 + $0x10] sm:$0xff]  ;;  %v93_v34 = vld [vmem:[%s1750_s0 + $0x18] sm:$0xff] }
  0x4f   :  { %1132 = vmatprep.subr.bf16.mxu1 %v1286_v1  ;;  %v97_v61 = vld [vmem:[%s1750_s0 + $0x38] sm:$0xff] }
  0x50   :  { %1119 = vmatpush3.bf16.msra.mxu0 %v1118_v38 }
  0x51   :  { %476 = vperm.xlu1 %1185, %v453_v25   ;;  %471 = vperm.xlu0 %1184, %v452_v26   ;;  %v752_v25 = vld [vmem:[#allocation6 + $0x70] sm:$0xff]  ;;  %v753_v26 = vld [vmem:[#allocation6 + $0x78] sm:$0xff] }
  0x52   :  { %1120 = vmatprep.subr.bf16.mxu0 %v1286_v1  ;;  %1134 = vmatpush3.bf16.msra.mxu1 %v1133_v8  ;;  %v1148_v27 = vpack.c.bf16 %v753_v26, %v752_v25 }
  0x53   :  { %1135 = vmatprep.subr.bf16.mxu1 %v1286_v1 }
  0x54   :  { %1122 = vmatpush3.bf16.msra.mxu0 %v1121_v43 }
  0x55   :  { %486 = vperm.xlu1 %1185, %v455_v30   ;;  %481 = vperm.xlu0 %1184, %v454_v31  }
  0x56   :  { %1123 = vmatprep.subr.bf16.mxu0 %v1286_v1  ;;  %1137 = vmatpush3.bf16.msra.mxu1 %v1136_v13 }
  0x57   :  { %1138 = vmatprep.subr.bf16.mxu1 %v1286_v1 }
  0x58   :  { %1125 = vmatpush3.bf16.msra.mxu0 %v1124_v48 }
  0x59   :  { %292 = vperm.xlu1 %1185, %v253_v35   ;;  %287 = vperm.xlu0 %1184, %v252_v36   ;;  %v91_v35 = vld [vmem:[%s1750_s0 + $0x8] sm:$0xff] }
  0x5a   :  { %1150 = vmatprep.subr.bf16.mxu0 %v1286_v1  ;;  %1140 = vmatpush3.bf16.msra.mxu1 %v1139_v18 }
  0x5b   :  { %1141 = vmatprep.subr.bf16.mxu1 %v1286_v1 }
  0x5d   :  { %496 = vperm.xlu1 %1185, %v457_v41   ;;  %491 = vperm.xlu0 %1184, %v456_v42  }
  0x5e   :  { %1143 = vmatpush3.bf16.msra.mxu1 %v1142_v21 }
  0x5f   :  { %1144 = vmatprep.subr.bf16.mxu1 %v1286_v1 }
  0x61   :  { %302 = vperm.xlu1 %1185, %v255_v46   ;;  %297 = vperm.xlu0 %1184, %v254_v47  }
  0x62   :  { %1146 = vmatpush3.bf16.msra.mxu1 %v1145_v24 }
  0x63   :  { %1147 = vmatprep.subr.bf16.mxu1 %v1286_v1 }
  0x65   :  { %506 = vperm.xlu1 %1185, %v459_v49   ;;  %501 = vperm.xlu0 %1184, %v458_v50   ;;  %v95_v49 = vld [vmem:[%s1750_s0 + $0x28] sm:$0xff]  ;;  %v94_v50 = vld [vmem:[%s1750_s0 + $0x20] sm:$0xff] }
  0x66   :  { %1149 = vmatpush3.bf16.msra.mxu1 %v1148_v27 }
  0x69   :  { %312 = vperm.xlu1 %1185, %v257_v51   ;;  %307 = vperm.xlu0 %1184, %v256_v52  }
  0x6d   :  { %516 = vperm.xlu1 %1185, %v461_v53   ;;  %511 = vperm.xlu0 %1184, %v460_v54  }
  0x71   :  { %322 = vperm.xlu1 %1185, %v259_v55   ;;  %317 = vperm.xlu0 %1184, %v258_v56  }
  0x75   :  { %526 = vperm.xlu1 %1185, %v463_v57   ;;  %521 = vperm.xlu0 %1184, %v462_v58  }
  0x79   :  { %332 = vperm.xlu1 %1185, %v261_v62   ;;  %327 = vperm.xlu0 %1184, %v260_v63   ;;  %v96_v62 = vld [vmem:[%s1750_s0 + $0x30] sm:$0xff] }
  0x7d   :  { %536 = vperm.xlu1 %1185, %v465_v4   ;;  %531 = vperm.xlu0 %1184, %v464_v5  }
  0x81   :  { %342 = vperm.xlu1 %1185, %v263_v9   ;;  %337 = vperm.xlu0 %1184, %v262_v10  }
  0x85   :  { %546 = vperm.xlu1 %1185, %v467_v14   ;;  %541 = vperm.xlu0 %1184, %v466_v15  }
  0xb8   :  { %v122_v30 = vpop.permute.xlu1 %121  ;;  %v112_v31 = vpop.permute.xlu0 %111 }
  0xb9   :  { %v151_v32 = vmul.f32 %v122_v30, %v92_v28  ;;  %v149_v33 = vmul.f32 %v112_v31, %v90_v29 }
  0xbb   :  { %v169_v36 = vrot.slane %v151_v32, 4  ;;  %v157_v38 = vrot.slane %v149_v33, 4 }
  0xbc   :  { %v127_v39 = vpop.permute.xlu1 %126  ;;  %v117_v40 = vpop.permute.xlu0 %116 }
  0xbd   :  { %v170_v41 = vadd.f32 %v169_v36, %v151_v32  ;;  %v158_v42 = vadd.f32 %v157_v38, %v149_v33  ;;  %v152_v43 = vmul.f32 %v127_v39, %v93_v34  ;;  %v150_v44 = vmul.f32 %v117_v40, %v91_v35 }
  0xbf   :  { %v171_v45 = vrot.slane %v170_v41, 2  ;;  %v159_v46 = vrot.slane %v158_v42, 2  ;;  %v175_v47 = vrot.slane %v152_v43, 4  ;;  %v163_v48 = vrot.slane %v150_v44, 4 }
  0xc0   :  { %v137_v51 = vpop.permute.xlu1 %136  ;;  %v132_v52 = vpop.permute.xlu0 %131 }
  0xc1   :  { %v160_v53 = vadd.f32 %v159_v46, %v158_v42  ;;  %v176_v54 = vadd.f32 %v175_v47, %v152_v43  ;;  %v164_v55 = vadd.f32 %v163_v48, %v150_v44  ;;  %v154_v56 = vmul.f32 %v137_v51, %v95_v49  ;;  %v833_v47 = vld [vmem:[#allocation8] sm:$0xff]  ;;  %v834_v48 = vld [vmem:[#allocation8 + $0x8] sm:$0xff] }
  0xc2   :  { %v153_v57 = vmul.f32 %v132_v52, %v94_v50  ;;  %v172_v58 = vadd.f32 %v171_v45, %v170_v41 }
  0xc3   :  { %v177_v59 = vrot.slane %v176_v54, 2  ;;  %v165_v60 = vrot.slane %v164_v55, 2  ;;  %v187_v63 = vrot.slane %v154_v56, 4  ;;  %v161_v4 = vrot.slane %v160_v53, 1 }
  0xc4   :  { %v181_v0 = vrot.slane %v153_v57, 4  ;;  %v147_v2 = vpop.permute.xlu1 %146  ;;  %v142_v3 = vpop.permute.xlu0 %141  ;;  %v173_v11 = vrot.slane %v172_v58, 1 }
  0xc5   :  { %v178_v5 = vadd.f32 %v177_v59, %v176_v54  ;;  %v166_v6 = vadd.f32 %v165_v60, %v164_v55  ;;  %v188_v7 = vadd.f32 %v187_v63, %v154_v56  ;;  %v156_v9 = vmul.f32 %v147_v2, %v97_v61  ;;  %v835_v56 = vld [vmem:[#allocation8 + $0x10] sm:$0xff]  ;;  %v231_v59 = vld [vmem:[%s1752_s2 + $0x8] sm:$0xff]  ;;  %v230_v60 = vld [vmem:[%s1752_s2] sm:$0xff] }
  0xc6   :  { %v182_v8 = vadd.f32 %v181_v0, %v153_v57  ;;  %v155_v10 = vmul.f32 %v142_v3, %v96_v62  ;;  %v162_v19 = vadd.f32 %v161_v4, %v160_v53  ;;  %v174_v26 = vadd.f32 %v173_v11, %v172_v58  ;;  %v836_v57 = vld [vmem:[#allocation8 + $0x18] sm:$0xff]  ;;  %v232_v2 = vld [vmem:[%s1752_s2 + $0x10] sm:$0xff]  ;;  %v837_v3 = vld [vmem:[#allocation8 + $0x20] sm:$0xff] }
  0xc7   :  { %v167_v12 = vrot.slane %v166_v6, 1  ;;  %v189_v13 = vrot.slane %v188_v7, 2  ;;  %v199_v15 = vrot.slane %v156_v9, 4  ;;  %v179_v20 = vrot.slane %v178_v5, 1  ;;  %v233_v61 = vld [vmem:[%s1752_s2 + $0x18] sm:$0xff]  ;;  %v838_v4 = vld [vmem:[#allocation8 + $0x28] sm:$0xff] }
  0xc8   :  { %v183_v14 = vrot.slane %v182_v8, 2  ;;  %v193_v16 = vrot.slane %v155_v10, 4  ;;  %v273_v17 = vpop.permute.xlu1 %272  ;;  %v268_v18 = vpop.permute.xlu0 %267  ;;  %v1151_v55 = vpack.c.bf16 %v834_v48, %v833_v47  ;;  %v1154_v0 = vpack.c.bf16 %v836_v57, %v835_v56 }
  0xc9   :  { %v168_v21 = vadd.f32 %v167_v12, %v166_v6  ;;  %v190_v22 = vadd.f32 %v189_v13, %v188_v7  ;;  %v200_v24 = vadd.f32 %v199_v15, %v156_v9  ;;  %v180_v34 = vadd.f32 %v179_v20, %v178_v5  ;;  %v840_v12 = vld [vmem:[#allocation8 + $0x38] sm:$0xff] }
  0xca   :  { %v184_v23 = vadd.f32 %v183_v14, %v182_v8  ;;  %v194_v25 = vadd.f32 %v193_v16, %v155_v10  ;;  %v346_v5 = vmul.f32 %v273_v17, %v231_v59  ;;  %v345_v6 = vmul.f32 %v268_v18, %v230_v60  ;;  %v841_v17 = vld [vmem:[#allocation8 + $0x40] sm:$0xff]  ;;  %v842_v18 = vld [vmem:[#allocation8 + $0x48] sm:$0xff]  ;;  %v847_v59 = vld [vmem:[#allocation8 + $0x70] sm:$0xff] }
  0xcb   :  { %v214_v27 = vsel %vm213_vm1, %v168_v21, %v162_v19  ;;  %v191_v28 = vrot.slane %v190_v22, 1  ;;  %v201_v30 = vrot.slane %v200_v24, 2  ;;  %v1157_v11 = vpack.c.bf16 %v838_v4, %v837_v3  ;;  %v848_v60 = vld [vmem:[#allocation8 + $0x78] sm:$0xff]  ;;  %v441_v3 = vld [vmem:[%s1754_s4 + $0x30] sm:$0xff] }
  0xcc   :  { %v185_v29 = vrot.slane %v184_v23, 1  ;;  %v195_v31 = vrot.slane %v194_v25, 2  ;;  %v283_v32 = vpop.permute.xlu1 %282  ;;  %v278_v33 = vpop.permute.xlu0 %277  ;;  %v216_v35 = vsel %vm215_vm2, %v174_v26, %v214_v27  ;;  %v361_v13 = vadd.f32 %v346_v5, %v345_v6  ;;  %v843_v27 = vld [vmem:[#allocation8 + $0x50] sm:$0xff]  ;;  %v241_v6 = vld [vmem:[%s1752_s2 + $0x58] sm:$0xff] }
  0xcd   :  { %v202_v38 = vadd.f32 %v201_v30, %v200_v24  ;;  %v192_v40 = vadd.f32 %v191_v28, %v190_v22  ;;  %v218_v41 = vsel %vm217_vm3, %v180_v34, %v216_v35  ;;  %v348_v7 = vmul.f32 %v283_v32, %v233_v61  ;;  %v436_v22 = vld [vmem:[%s1754_s4 + $0x8] sm:$0xff]  ;;  %v844_v28 = vld [vmem:[#allocation8 + $0x58] sm:$0xff]  ;;  %v234_v34 = vld [vmem:[%s1752_s2 + $0x20] sm:$0xff] }
  0xce   :  { %v186_v36 = vadd.f32 %v185_v29, %v184_v23  ;;  %v196_v39 = vadd.f32 %v195_v31, %v194_v25  ;;  %v347_v8 = vmul.f32 %v278_v33, %v232_v2  ;;  %v362_v20 = vrot.slane %v361_v13, 4  ;;  %v435_v23 = vld [vmem:[%s1754_s4] sm:$0xff]  ;;  %v235_v33 = vld [vmem:[%s1752_s2 + $0x28] sm:$0xff]  ;;  %v237_v35 = vld [vmem:[%s1752_s2 + $0x38] sm:$0xff] }
  0xcf   :  { %v203_v42 = vrot.slane %v202_v38, 1  ;;  %v1163_v26 = vpack.c.bf16 %v842_v18, %v841_v17  ;;  %v440_v61 = vld [vmem:[%s1754_s4 + $0x28] sm:$0xff] }
  0xd0   :  { %v197_v43 = vrot.slane %v196_v39, 1  ;;  %v1575_v44 = vpop.permute.xlu1 %476  ;;  %v1577_v45 = vpop.permute.xlu0 %471  ;;  %v220_v46 = vsel %vm219_vm4, %v186_v36, %v218_v41  ;;  %v368_v14 = vadd.f32 %v348_v7, %v347_v8  ;;  %v363_v29 = vadd.f32 %v362_v20, %v361_v13  ;;  %v845_v41 = vld [vmem:[#allocation8 + $0x60] sm:$0xff]  ;;  %v240_v7 = vld [vmem:[%s1752_s2 + $0x50] sm:$0xff] }
  0xd1   :  { %v204_v50 = vadd.f32 %v203_v42, %v202_v38  ;;  %v222_v51 = vsel %vm221_vm5, %v192_v40, %v220_v46  ;;  %v550_v30 = vmul.f32 %v1575_v44, %v436_v22  ;;  %v549_v31 = vmul.f32 %v1577_v45, %v435_v23  ;;  %v236_v40 = vld [vmem:[%s1752_s2 + $0x30] sm:$0xff]  ;;  %v846_v42 = vld [vmem:[#allocation8 + $0x68] sm:$0xff] }
  0xd2   :  { %v198_v49 = vadd.f32 %v197_v43, %v196_v39  ;;  %v369_v21 = vrot.slane %v368_v14, 4  ;;  %v1166_v39 = vpack.c.bf16 %v844_v28, %v843_v27  ;;  %v438_v43 = vld [vmem:[%s1754_s4 + $0x18] sm:$0xff]  ;;  %v364_v44 = vrot.slane %v363_v29, 2  ;;  %v437_v46 = vld [vmem:[%s1754_s4 + $0x10] sm:$0xff] }
  0xd3   :  { %v565_v45 = vadd.f32 %v550_v30, %v549_v31 }
  0xd4   :  { %v1581_v52 = vpop.permute.xlu1 %486  ;;  %v1583_v53 = vpop.permute.xlu0 %481  ;;  %v224_v54 = vsel %vm223_vm6, %v198_v49, %v222_v51  ;;  %v370_v32 = vadd.f32 %v369_v21, %v368_v14  ;;  %v239_v49 = vld [vmem:[%s1752_s2 + $0x48] sm:$0xff]  ;;  %v365_v8 = vadd.f32 %v364_v44, %v363_v29 }
  0xd5   :  { %v226_v58 = vsel %vm225_vm7, %v204_v50, %v224_v54  ;;  %v238_v50 = vld [vmem:[%s1752_s2 + $0x40] sm:$0xff]  ;;  %v551_v2 = vmul.f32 %v1583_v53, %v437_v46 }
  0xd6   :  { %1030 = vmatmul.mubr.f32.vlgmr.msra.gmra.mrb[0].mxu0 %v226_v58  ;;  %v371_v51 = vrot.slane %v370_v32, 2  ;;  %v1169_v58 = vpack.c.bf16 %v846_v42, %v845_v41  ;;  %v443_v53 = vld [vmem:[%s1754_s4 + $0x40] sm:$0xff]  ;;  %v243_v42 = vld [vmem:[%s1752_s2 + $0x68] sm:$0xff] }
  0xd7   :  { %1152 = vmatpush3.bf16.msra.mxu0 %v1151_v55  ;;  %1099 = vmatprep.mubr.msk.f32.mxu0 %vm1287_vm0, %v1288_v37  ;;  %v839_v37 = vld [vmem:[#allocation8 + $0x30] sm:$0xff] }
  0xd8   :  { %v293_v62 = vpop.permute.xlu1 %292  ;;  %v288_v63 = vpop.permute.xlu0 %287  ;;  %1153 = vmatprep.subr.bf16.mxu0 %v1286_v1  ;;  %v1160_v19 = vpack.c.bf16 %v840_v12, %v839_v37  ;;  %v1172_v12 = vpack.c.bf16 %v848_v60, %v847_v59  ;;  %v372_v13 = vadd.f32 %v371_v51, %v370_v32 }
  0xd9   :  { %v350_v47 = vmul.f32 %v293_v62, %v235_v33  ;;  %v349_v48 = vmul.f32 %v288_v63, %v234_v34  ;;  %v439_v62 = vld [vmem:[%s1754_s4 + $0x20] sm:$0xff]  ;;  %v442_v63 = vld [vmem:[%s1754_s4 + $0x38] sm:$0xff] }
  0xdb   :  { %1155 = vmatpush3.bf16.msra.mxu0 %v1154_v0  ;;  %v552_v0 = vmul.f32 %v1581_v52, %v438_v43  ;;  %v375_v37 = vadd.f32 %v350_v47, %v349_v48  ;;  %v444_v52 = vld [vmem:[%s1754_s4 + $0x48] sm:$0xff]  ;;  %v242_v43 = vld [vmem:[%s1752_s2 + $0x60] sm:$0xff] }
  0xdc   :  { %v1602_v9 = vpop.permute.xlu1 %496  ;;  %v1604_v10 = vpop.permute.xlu0 %491  ;;  %1156 = vmatprep.subr.bf16.mxu0 %v1286_v1 }
  0xdd   :  { %v554_v14 = vmul.f32 %v1602_v9, %v440_v61  ;;  %v572_v23 = vadd.f32 %v552_v0, %v551_v2  ;;  %v446_v9 = vld [vmem:[%s1754_s4 + $0x58] sm:$0xff]  ;;  %v376_v29 = vrot.slane %v375_v37, 4 }
  0xdf   :  { %1158 = vmatpush3.bf16.msra.mxu0 %v1157_v11  ;;  %v566_v11 = vrot.slane %v565_v45, 4  ;;  %v377_v44 = vadd.f32 %v376_v29, %v375_v37 }
  0xe0   :  { %v303_v15 = vpop.permute.xlu1 %302  ;;  %v298_v16 = vpop.permute.xlu0 %297  ;;  %1159 = vmatprep.subr.bf16.mxu0 %v1286_v1 }
  0xe1   :  { %v352_v54 = vmul.f32 %v303_v15, %v237_v35  ;;  %v351_v55 = vmul.f32 %v298_v16, %v236_v40  ;;  %v553_v15 = vmul.f32 %v1604_v10, %v439_v62  ;;  %v445_v10 = vld [vmem:[%s1754_s4 + $0x50] sm:$0xff]  ;;  %v567_v30 = vadd.f32 %v566_v11, %v565_v45  ;;  %v448_v62 = vld [vmem:[%s1754_s4 + $0x68] sm:$0xff] }
  0xe3   :  { %1161 = vmatpush3.bf16.msra.mxu0 %v1160_v19  ;;  %v382_v16 = vadd.f32 %v352_v54, %v351_v55  ;;  %v568_v47 = vrot.slane %v567_v30, 2 }
  0xe4   :  { %v1614_v24 = vpop.permute.xlu1 %506  ;;  %v1616_v25 = vpop.permute.xlu0 %501  ;;  %1162 = vmatprep.subr.bf16.mxu0 %v1286_v1 }
  0xe5   :  { %v556_v18 = vmul.f32 %v1614_v24, %v442_v63  ;;  %v555_v20 = vmul.f32 %v1616_v25, %v441_v3  ;;  %v579_v25 = vadd.f32 %v554_v14, %v553_v15  ;;  %v383_v31 = vrot.slane %v382_v16, 4 }
  0xe6   :  { %v378_v63 = vrot.slane %v377_v44, 2 }
  0xe7   :  { %1164 = vmatpush3.bf16.msra.mxu0 %v1163_v26  ;;  %v586_v34 = vadd.f32 %v556_v18, %v555_v20  ;;  %v580_v48 = vrot.slane %v579_v25, 4 }
  0xe8   :  { %v313_v36 = vpop.permute.xlu1 %312  ;;  %v308_v38 = vpop.permute.xlu0 %307  ;;  %1165 = vmatprep.subr.bf16.mxu0 %v1286_v1  ;;  %v379_v18 = vadd.f32 %v378_v63, %v377_v44 }
  0xe9   :  { %v354_v4 = vmul.f32 %v313_v36, %v239_v49  ;;  %v353_v5 = vmul.f32 %v308_v38, %v238_v50  ;;  %v366_v38 = vrot.slane %v365_v8, 1  ;;  %v384_v49 = vadd.f32 %v383_v31, %v382_v16 }
  0xea   :  { %v587_v55 = vrot.slane %v586_v34, 4 }
  0xeb   :  { %1167 = vmatpush3.bf16.msra.mxu0 %v1166_v39  ;;  %v389_v26 = vadd.f32 %v354_v4, %v353_v5  ;;  %v573_v39 = vrot.slane %v572_v23, 4  ;;  %v447_v4 = vld [vmem:[%s1754_s4 + $0x60] sm:$0xff]  ;;  %v1696_v5 = vadd.f32 %v568_v47, %v567_v30 }
  0xec   :  { %v517_v56 = vpop.permute.xlu1 %516  ;;  %v512_v57 = vpop.permute.xlu0 %511  ;;  %1168 = vmatprep.subr.bf16.mxu0 %v1286_v1 }
  0xed   :  { %v558_v27 = vmul.f32 %v517_v56, %v444_v52  ;;  %v557_v28 = vmul.f32 %v512_v57, %v443_v53  ;;  %v390_v40 = vrot.slane %v389_v26, 4  ;;  %v574_v59 = vadd.f32 %v573_v39, %v572_v23 }
  0xee   :  { %v588_v52 = vadd.f32 %v587_v55, %v586_v34  ;;  %v570_v23 = vrot.slane %v1696_v5, 1  ;;  %v450_v34 = vld [vmem:[%s1754_s4 + $0x78] sm:$0xff] }
  0xef   :  { %1170 = vmatpush3.bf16.msra.mxu0 %v1169_v58  ;;  %v593_v41 = vadd.f32 %v558_v27, %v557_v28  ;;  %v367_v58 = vadd.f32 %v366_v38, %v365_v8  ;;  %v391_v60 = vadd.f32 %v390_v40, %v389_v26 }
  0xf0   :  { %v323_v19 = vpop.permute.xlu1 %322  ;;  %v318_v17 = vpop.permute.xlu0 %317  ;;  %1171 = vmatprep.subr.bf16.mxu0 %v1286_v1  ;;  %v373_v1 = vrot.slane %v372_v13, 1  ;;  %v589_v29 = vrot.slane %v588_v52, 2 }
  0xf1   :  { %v356_v21 = vmul.f32 %v323_v19, %v241_v6  ;;  %v355_v22 = vmul.f32 %v318_v17, %v240_v7  ;;  %v594_v61 = vrot.slane %v593_v41, 4  ;;  %v581_v6 = vadd.f32 %v580_v48, %v579_v25  ;;  %v245_v19 = vld [vmem:[%s1752_s2 + $0x78] sm:$0xff]  ;;  %v244_v17 = vld [vmem:[%s1752_s2 + $0x70] sm:$0xff] }
  0xf2   :  { %v374_v54 = vadd.f32 %v373_v1, %v372_v13  ;;  %v385_v7 = vrot.slane %v384_v49, 2  ;;  %v575_v13 = vrot.slane %v574_v59, 2  ;;  %v392_v14 = vrot.slane %v391_v60, 2 }
  0xf3   :  { %v396_v24 = vadd.f32 %v356_v21, %v355_v22  ;;  %1173 = vmatpush3.bf16.msra.mxu0 %v1172_v12  ;;  %v595_v15 = vadd.f32 %v594_v61, %v593_v41  ;;  %v582_v26 = vrot.slane %v581_v6, 2  ;;  %v590_v47 = vadd.f32 %v589_v29, %v588_v52 }
  0xf4   :  { %v527_v32 = vpop.permute.xlu1 %526  ;;  %v522_v33 = vpop.permute.xlu0 %521  ;;  %v1699_v37 = vsel %vm213_vm1, %v374_v54, %v367_v58  ;;  %v386_v27 = vadd.f32 %v385_v7, %v384_v49  ;;  %v576_v31 = vadd.f32 %v575_v13, %v574_v59  ;;  %v571_v7 = vadd.f32 %v570_v23, %v1696_v5 }
  0xf5   :  { %v560_v35 = vmul.f32 %v527_v32, %v446_v9  ;;  %v559_v36 = vmul.f32 %v522_v33, %v445_v10  ;;  %v397_v45 = vrot.slane %v396_v24, 4  ;;  %v393_v32 = vadd.f32 %v392_v14, %v391_v60 }
  0xf6   :  { %v596_v33 = vrot.slane %v595_v15, 2  ;;  %v583_v41 = vadd.f32 %v582_v26, %v581_v6 }
  0xf7   :  { %v600_v46 = vadd.f32 %v560_v35, %v559_v36  ;;  %v398_v0 = vadd.f32 %v397_v45, %v396_v24  ;;  %v449_v35 = vld [vmem:[%s1754_s4 + $0x70] sm:$0xff]  ;;  %v380_v36 = vrot.slane %v379_v18, 1  ;;  %v394_v54 = vrot.slane %v393_v32, 1 }
  0xf8   :  { %v333_v50 = vpop.permute.xlu1 %332  ;;  %v328_v51 = vpop.permute.xlu0 %327  ;;  %v597_v55 = vadd.f32 %v596_v33, %v595_v15 }
  0xf9   :  { %v358_v56 = vmul.f32 %v333_v50, %v243_v42  ;;  %v357_v57 = vmul.f32 %v328_v51, %v242_v43  ;;  %v601_v2 = vrot.slane %v600_v46, 4  ;;  %v399_v20 = vrot.slane %v398_v0, 2 }
  0xfa   :  { %v387_v42 = vrot.slane %v386_v27, 1  ;;  %v577_v51 = vrot.slane %v576_v31, 1  ;;  %v381_v61 = vadd.f32 %v380_v36, %v379_v18  ;;  %v598_v52 = vrot.slane %v597_v55, 1  ;;  %v943_v36 = vld [vmem:[%s1757_s7] ss:$0 sm:$0xff]  ;;  %s1252_s7 = scalar_lea.vmem %s934_s25, 384 }
  0xfb   :  { %v403_v3 = vadd.f32 %v358_v56, %v357_v57  ;;  %v602_v21 = vadd.f32 %v601_v2, %v600_v46  ;;  %v400_v38 = vadd.f32 %v399_v20, %v398_v0  ;;  %p1253_p10 = scmp.ne.s32.totalorder %s934_s25, %s1252_s7  ;;  %p1258_p12 = scmp.lt.s32.totalorder %s1252_s7, %s1252_s7 }
  0xfc   :  { %v537_v8 = vpop.permute.xlu1 %536  ;;  %v532_v11 = vpop.permute.xlu0 %531  ;;  %v388_v2 = vadd.f32 %v387_v42, %v386_v27  ;;  %v599_v23 = vadd.f32 %v598_v52, %v597_v55 }
  0xfd   :  { %v404_v53 = vrot.slane %v403_v3, 4  ;;  %v562_v12 = vmul.f32 %v537_v8, %v448_v62  ;;  %v561_v16 = vmul.f32 %v532_v11, %v447_v4  ;;  %v603_v39 = vrot.slane %v602_v21, 2  ;;  %p1259_p13 = por %p1258_p12, %p1257_p11 }
  0xfe   :  { %v401_v57 = vrot.slane %v400_v38, 1  ;;  %v584_v62 = vrot.slane %v583_v41, 1  ;;  %v578_v8 = vadd.f32 %v577_v51, %v576_v31  ;;  %v395_v11 = vadd.f32 %v394_v54, %v393_v32 }
  0xff   :  { %v405_v22 = vadd.f32 %v404_v53, %v403_v3  ;;  %v607_v28 = vadd.f32 %v562_v12, %v561_v16  ;;  %v604_v58 = vadd.f32 %v603_v39, %v602_v21  ;;  %v591_v3 = vrot.slane %v590_v47, 1  ;;  %p1260_p0 = pnand %p1259_p13, %p1253_p10 }
 0x100   :  { %v343_v9 = vpop.permute.xlu1 %342  ;;  %v338_v10 = vpop.permute.xlu0 %337  ;;  %v402_v53 = vadd.f32 %v401_v57, %v400_v38  ;;  %v585_v15 = vadd.f32 %v584_v62, %v583_v41  ;;  %v629_v5 = vsel %vm213_vm1, %v578_v8, %v571_v7  ;;  %v944_v41 = vld [vmem:[%s1759_s9] ss:$0 sm:$0xff] }
 0x101   :  { %v406_v24 = vrot.slane %v405_v22, 2  ;;  %v360_v30 = vmul.f32 %v343_v9, %v245_v19  ;;  %v359_v25 = vmul.f32 %v338_v10, %v244_v17  ;;  %v608_v1 = vrot.slane %v607_v28, 4 }
 0x102   :  { %v605_v12 = vrot.slane %v604_v58, 1  ;;  %v426_v17 = vsel %vm215_vm2, %v381_v61, %v1699_v37  ;;  %v592_v18 = vadd.f32 %v591_v3, %v590_v47  ;;  %v630_v29 = vsel %vm215_vm2, %v585_v15, %v629_v5 }
 0x103   :  { %v410_v40 = vadd.f32 %v360_v30, %v359_v25  ;;  %v407_v43 = vadd.f32 %v406_v24, %v405_v22  ;;  %v609_v44 = vadd.f32 %v608_v1, %v607_v28  ;;  %v427_v22 = vsel %vm217_vm3, %v388_v2, %v426_v17 }
 0x104   :  { %v547_v45 = vpop.permute.xlu1 %546  ;;  %v542_v46 = vpop.permute.xlu0 %541  ;;  %v428_v26 = vsel %vm219_vm4, %v395_v11, %v427_v22  ;;  %v606_v27 = vadd.f32 %v605_v12, %v604_v58  ;;  %v631_v31 = vsel %vm217_vm3, %v592_v18, %v630_v29 }
 0x105   :  { %v411_v48 = vrot.slane %v410_v40, 4  ;;  %v564_v49 = vmul.f32 %v547_v45, %v450_v34  ;;  %v563_v50 = vmul.f32 %v542_v46, %v449_v35  ;;  %v610_v56 = vrot.slane %v609_v44, 2  ;;  %v945_v45 = vld [vmem:[%s1761_s11] ss:$0 sm:$0xff] }
 0x106   :  { %v408_v63 = vrot.slane %v407_v43, 1  ;;  %v429_v10 = vsel %vm221_vm5, %v402_v53, %v428_v26  ;;  %v632_v32 = vsel %vm219_vm4, %v599_v23, %v631_v31 }
 0x107   :  { %v412_v59 = vadd.f32 %v411_v48, %v410_v40  ;;  %v614_v60 = vadd.f32 %v564_v49, %v563_v50  ;;  %v611_v0 = vadd.f32 %v610_v56, %v609_v44  ;;  %v633_v1 = vsel %vm221_vm5, %v606_v27, %v632_v32 }
 0x108   :  { %v409_v19 = vadd.f32 %v408_v63, %v407_v43 }
 0x109   :  { %v413_v4 = vrot.slane %v412_v59, 2  ;;  %v615_v6 = vrot.slane %v614_v60, 4  ;;  %v612_v16 = vrot.slane %v611_v0, 1 }
 0x10a   :  { %v430_v37 = vsel %vm223_vm6, %v409_v19, %v429_v10 }
 0x10b   :  { %v414_v13 = vadd.f32 %v413_v4, %v412_v59  ;;  %v616_v14 = vadd.f32 %v615_v6, %v614_v60  ;;  %v613_v24 = vadd.f32 %v612_v16, %v611_v0 }
 0x10d   :  { %v617_v20 = vrot.slane %v616_v14, 2  ;;  %v415_v21 = vrot.slane %v414_v13, 1  ;;  %v634_v34 = vsel %vm223_vm6, %v613_v24, %v633_v1 }
 0x10f   :  { %v618_v28 = vadd.f32 %v617_v20, %v616_v14  ;;  %v416_v9 = vadd.f32 %v415_v21, %v414_v13 }
 0x111   :  { %v619_v30 = vrot.slane %v618_v28, 1  ;;  %v431_v25 = vsel %vm225_vm7, %v416_v9, %v430_v37 }
 0x112   :  { %1065 = vmatmul.mubr.f32.vlgmr.msra.gmra.mrb[0].mxu1 %v431_v25 }
 0x113   :  { %v620_v33 = vadd.f32 %v619_v30, %v618_v28 }
 0x115   :  { %v635_v35 = vsel %vm225_vm7, %v620_v33, %v634_v34 }
 0x116   :  { %1100 = vmatmul.mubr.f32.vlgmr.msra.gmra.mrb[2].mxu0 %v635_v35 }
 0x1a9   :  { %v732_v38 = vpop.f32.mrb[0].mxu0 }
 0x1aa   :  { %v733_v39 = vadd.f32 %v943_v36, %v732_v38  ;;  %v1031_v40 = vpop.f32.mrb[1].mxu0 }
 0x1ac   :  { %736 = vst [vmem:[#allocation9] sm:$0xff] %v733_v39 }
 0x1e5   :  { %v827_v42 = vpop.f32.mrb[0].mxu1 }
 0x1e6   :  { %v828_v43 = vadd.f32 %v944_v41, %v827_v42  ;;  %v1066_v44 = vpop.f32.mrb[1].mxu1 }
 0x1e8   :  { %831 = vst [vmem:[#allocation9 + $0x8] sm:$0xff] %v828_v43 }
 0x1e9   :  { %v922_v46 = vpop.f32.mrb[2].mxu0 }
 0x1ea   :  { %v923_v47 = vadd.f32 %v945_v45, %v922_v46  ;;  %v1101_v48 = vpop.f32.mrb[3].mxu0 }
 0x1ec   :  { %926 = vst [vmem:[#allocation9 + $0x10] sm:$0xff] %v923_v47 }
 0x1ed   :  { %1263 = shalt.err (!%p1260_p0)
}
 0x1ee   :  { %s1264_s27 = scalar_lea.hbm %s1762_s12, 384 }
 0x1ef   :  { %p1265_p1 = scmp.ne.s32.totalorder %s1762_s12, %s1264_s27  ;;  %p1268_p2 = scmp.lt.u32.totalorder %s1264_s27, %s1762_s12 }
 0x1f1   :  { %p1270_p3 = pnand %p1268_p2, %p1265_p1 }
 0x1f3   :  { %1273 = shalt.err (!%p1270_p3)
}
 0x1f4   :  { %936 = dma.vmem_to_hbm [thread:$0]  %s934_s25, 384, %s1762_s12, [#allocation5]  }
 0x1f5   :  { %1278 = dma.done.wait [#allocation5], 384  }
 0x1f6   :  { %1279 = vsyncadd [#allocation5], 4294966912 }
 0x1f7   :  { %940 = vsyncpa [#allocation4], 1 }
 0x1f8   :  { %941 = vsyncpa [#allocation7], 1 }
 0x1f9   :  { %942 = vsyncpa [#allocation5], 1 }

</bundles_post_ra>
